<compile_context>
chip_gen: v7x
topology: tpu7x:2x2x1
jax: 0.10.0
libtpu: 0.0.40
codegen_flags: <defaults>
</compile_context>

<pallas_src>
import math

import jax
import jax.numpy as jnp
from jax.experimental import pallas as pl
from jax.experimental.pallas import tpu as pltpu

# VGG19 "features" config, truncated right after the conv whose ReLU is
# nn.Sequential index 31 (relu5_2). int = Conv3x3(pad=1)+ReLU, 'M' = MaxPool2x2.
VGG_CFG = [64, 64, 'M', 128, 128, 'M', 256, 256, 256, 256, 'M',
           512, 512, 512, 512, 'M', 512, 512]
LAYER_INDICES = [3, 8, 13, 22, 31]   # ReLU outputs: relu1_2, 2_2, 3_2, 4_2, 5_2

_VMEM_LIMIT_CACHE = None


def _vmem_limit_bytes():
    """Per-generation safe VMEM limit (v7x has only 64 MiB per TensorCore)."""
    global _VMEM_LIMIT_CACHE
    if _VMEM_LIMIT_CACHE is None:
        try:
            cap = int(pltpu.get_tpu_info().vmem_capacity_bytes)
        except Exception:
            cap = 64 * 1024 * 1024
        _VMEM_LIMIT_CACHE = int(min(cap * 3 // 4, 96 * 1024 * 1024))
    return _VMEM_LIMIT_CACHE


def _pick_row_tile(H, W, Cout, pool):
    """Largest divisor of H whose (TH*W, Cout) f32 accumulator stays <= ~1 MiB."""
    budget = 1 << 20
    divs = [d for d in range(1, H + 1) if H % d == 0 and (not pool or d % 2 == 0)]
    fit = [d for d in divs if d * W * Cout * 4 <= budget]
    if fit:
        return max(fit)
    return min(divs) if divs else H


# ----------------------------- fused conv kernel -----------------------------

def _make_conv_kernel(TH, W, Cin, Cout, pool, keep_relu):
    """3x3 conv (pad=1) + bias + ReLU (+ fused 2x2 maxpool) for one row tile."""
    THo, Wo = TH // 2, W // 2

    def kernel(x_ref, w_ref, b_ref, *rest):
        rest = list(rest)
        o_relu_ref = rest.pop(0) if keep_relu else None
        o_pool_ref = rest.pop(0) if pool else None
        pad_ref = rest.pop(0)                       # (H+2, W, Cin) bf16, H-halo'd image
        m_ref = rest.pop(0) if pool else None       # (THo, W, Cout) f32

        H = x_ref.shape[1]
        r = pl.program_id(1)

        # Build the H-halo'd copy of this image once (first row tile of each image);
        # row tiles r > 0 reuse it, so the copy is amortized over the whole image.
        @pl.when(r == 0)
        def _():
            pad_ref[...] = jnp.zeros_like(pad_ref)
            pad_ref[1:H + 1, :, :] = x_ref[0]

        row0 = r * TH

        # Border masks for the W halo — computed once per tile, reused for all dy.
        col = jax.lax.broadcasted_iota(jnp.int32, (TH, W, Cin), 1)
        west_mask = col == 0
        east_mask = col == W - 1

        acc = jnp.zeros((TH * W, Cout), jnp.float32)

        for dy in range(3):
            # (TH, W, Cin): rows row0+dy .. row0+dy+TH-1 of the H-padded image,
            # i.e. image rows (out_row + dy - 1) for this tile's output rows.
            rows_bf = pad_ref[pl.ds(row0 + dy, TH), :, :]
            if W == 1:
                west = jnp.zeros((TH, W, Cin), jnp.bfloat16)
                east = jnp.zeros((TH, W, Cin), jnp.bfloat16)
            else:
                # West / east neighbours along W via XLU rolls + zero border mask
                # (done in f32 to keep the sublane roll on an unpacked layout).
                rows_f = rows_bf.astype(jnp.float32)
                west = jnp.where(west_mask, 0.0,
                                 pltpu.roll(rows_f, 1, axis=1)).astype(jnp.bfloat16)
                east = jnp.where(east_mask, 0.0,
                                 pltpu.roll(rows_f, W - 1, axis=1)).astype(jnp.bfloat16)
            # Centre tap feeds the MXU directly from the bf16 scratch (no casts).
            for dx, tap in enumerate((west, rows_bf, east)):
                acc = acc + jnp.dot(tap.reshape(TH * W, Cin), w_ref[dy, dx],
                                    preferred_element_type=jnp.float32)

        acc = acc + b_ref[...]                      # (1, Cout) f32 broadcast
        y = jnp.maximum(acc, 0.0).reshape(TH, W, Cout)

        if keep_relu:
            o_relu_ref[0] = y.astype(o_relu_ref.dtype)

        if pool:
            # Row pairing is a free leading-dim reshape + reduce; column pairing
            # uses stride-2 sublane reads from a small VMEM scratch.
            m_ref[...] = jnp.max(y.reshape(THo, 2, W, Cout), axis=1)
            p = jnp.maximum(m_ref[:, pl.ds(0, Wo, 2), :],
                            m_ref[:, pl.ds(1, Wo, 2), :])
            o_pool_ref[0] = p.astype(o_pool_ref.dtype)

    return kernel


def conv_block(x, w, b, *, pool, keep_relu):
    """x: (N,H,W,Cin) bf16, w: (3,3,Cin,Cout) bf16, b: (Cout,) f32."""
    N, H, W, Cin = x.shape
    Cout = w.shape[-1]
    TH = _pick_row_tile(H, W, Cout, pool)
    R = H // TH
    THo, Wo = TH // 2, W // 2

    out_shapes, out_specs = [], []
    if keep_relu:
        out_shapes.append(jax.ShapeDtypeStruct((N, H, W, Cout), jnp.bfloat16))
        out_specs.append(pl.BlockSpec((1, TH, W, Cout), lambda n, r: (n, r, 0, 0)))
    if pool:
        out_shapes.append(jax.ShapeDtypeStruct((N, H // 2, W // 2, Cout), jnp.bfloat16))
        out_specs.append(pl.BlockSpec((1, THo, Wo, Cout), lambda n, r: (n, r, 0, 0)))

    scratch = [pltpu.VMEM((H + 2, W, Cin), jnp.bfloat16)]
    if pool:
        scratch.append(pltpu.VMEM((THo, W, Cout), jnp.float32))

    flops = 2 * N * H * W * 9 * Cin * Cout
    bytes_accessed = 2 * (N * H * W * Cin + 9 * Cin * Cout) + 4 * Cout
    for s in out_shapes:
        bytes_accessed += 2 * math.prod(s.shape)
    cost = pl.CostEstimate(flops=flops, transcendentals=0,
                           bytes_accessed=int(bytes_accessed))

    kernel = _make_conv_kernel(TH, W, Cin, Cout, pool, keep_relu)
    multi = len(out_shapes) > 1

    res = pl.pallas_call(
        kernel,
        out_shape=tuple(out_shapes) if multi else out_shapes[0],
        grid=(N, R),
        in_specs=[
            # Whole image resident across the row axis (DMA'd once per image).
            pl.BlockSpec((1, H, W, Cin), lambda n, r: (n, 0, 0, 0)),
            # Weights / bias resident across the whole grid (DMA'd once per call).
            pl.BlockSpec((3, 3, Cin, Cout), lambda n, r: (0, 0, 0, 0)),
            pl.BlockSpec((1, Cout), lambda n, r: (0, 0)),
        ],
        out_specs=tuple(out_specs) if multi else out_specs[0],
        scratch_shapes=scratch,
        compiler_params=pltpu.CompilerParams(
            dimension_semantics=("parallel", "arbitrary"),
            vmem_limit_bytes=_vmem_limit_bytes(),
        ),
        cost_estimate=cost,
    )(x, w, b.reshape(1, Cout))

    return res if multi else (res,)


# ------------------------- parameters / forward ------------------------------

def init_vgg19_params(key):
    """Deterministic He-init conv params with the exact VGG19 shapes (HWIO)."""
    params = []
    cin = 3
    for v in VGG_CFG:
        if v == 'M':
            continue
        key, kw, kb = jax.random.split(key, 3)
        scale = (2.0 / (cin * 9)) ** 0.5
        w = jax.random.normal(kw, (3, 3, cin, v), jnp.float32) * scale
        b = jax.random.normal(kb, (v,), jnp.float32) * 0.01
        params.append((w, b))
        cin = v
    return params


def prepare_params(params, std):
    """Fold 1/std into conv1_1 and cast weights to bf16 (biases stay f32)."""
    out = []
    for li, (w, b) in enumerate(params):
        if li == 0:
            w = w / std.reshape(1, 1, 3, 1)
        out.append((w.astype(jnp.bfloat16), b.astype(jnp.float32)))
    return out


def vgg_features_forward(x_nchw, params, mean, std):
    """Mirrors VGGFeatures.forward; collects ReLU outputs at indices [3,8,13,22,31]."""
    folded = prepare_params(params, std)

    # NCHW -> NHWC; mean subtraction fuses into this one pass (1/std is already
    # folded into conv1_1's weights), so zero padding stays exactly equivalent.
    x = jnp.transpose(x_nchw, (0, 2, 3, 1)).astype(jnp.float32)
    x = (x - mean.reshape(1, 1, 1, 3)).astype(jnp.bfloat16)

    feats = []
    idx = 0   # running nn.Sequential layer index
    ci = 0    # conv param counter
    i = 0     # position in VGG_CFG
    while i < len(VGG_CFG) and idx <= max(LAYER_INDICES):
        assert VGG_CFG[i] != 'M'
        w, b = folded[ci]
        relu_idx = idx + 1
        pool = (i + 1 < len(VGG_CFG)) and (VGG_CFG[i + 1] == 'M')
        collect = relu_idx in LAYER_INDICES
        keep_relu = collect or not pool

        outs = conv_block(x, w, b, pool=pool, keep_relu=keep_relu)
        if keep_relu and pool:
            relu_out, pool_out = outs
        elif pool:
            (pool_out,) = outs
            relu_out = None
        else:
            (relu_out,) = outs
            pool_out = None

        if collect:
            feats.append(relu_out)
        x = pool_out if pool else relu_out

        ci += 1
        idx += 3 if pool else 2
        i += 2 if pool else 1

    # Return features in NCHW f32 to match the PyTorch module's outputs.
    return [jnp.transpose(f, (0, 3, 1, 2)).astype(jnp.float32) for f in feats]


if __name__ == "__main__":
    key = jax.random.PRNGKey(0)
    kx, kp = jax.random.split(key)

    # PyTorch-style NCHW input (batch=2, 3 channels as implied by mean/std, 16x16)
    x = jax.random.uniform(kx, (2, 3, 16, 16), jnp.float32)
    params = init_vgg19_params(kp)
    mean = jnp.array([0.485, 0.456, 0.406], jnp.float32)
    std = jnp.array([0.229, 0.224, 0.225], jnp.float32)

    feats = vgg_features_forward(x, params, mean, std)
    feats = jax.block_until_ready(feats)

    expected = [(2, 64, 16, 16), (2, 128, 8, 8), (2, 256, 4, 4),
                (2, 512, 2, 2), (2, 512, 1, 1)]
    assert [tuple(f.shape) for f in feats] == expected, \
        [tuple(f.shape) for f in feats]
    assert all(bool(jnp.all(jnp.isfinite(f))) for f in feats)

    print("KERNEL_OK")
</pallas_src>

<mosaic_0001>
module attributes {stable_mosaic.version = 11 : i64} {
  func.func @kernel(%arg0: i32, %arg1: i32, %arg2: memref<1x16x16x3xbf16, #tpu.memory_space<vmem>>, %arg3: memref<3x3x3x64xbf16, #tpu.memory_space<vmem>>, %arg4: memref<1x64xf32, #tpu.memory_space<vmem>>, %arg5: memref<1x16x16x64xbf16, #tpu.memory_space<vmem>>, %arg6: memref<18x16x3xbf16, #tpu.memory_space<vmem>>) attributes {dimension_semantics = [#tpu.dimension_semantics<parallel>, #tpu.dimension_semantics<arbitrary>], iteration_bounds = array<i64: 2, 1>, scalar_prefetch = 0 : i64, scratch_operands = 1 : i64, tpu.core_type = #tpu.core_type<tc>, window_params = [{transform_indices = @transform_0, window_bounds = array<i64: 1, 16, 16, 3>}, {pipeline_mode = #tpu.pipeline_mode<synchronous>, transform_indices = @transform_1, window_bounds = array<i64: 3, 3, 3, 64>}, {pipeline_mode = #tpu.pipeline_mode<synchronous>, transform_indices = @transform_2, window_bounds = array<i64: 1, 64>}, {transform_indices = @transform_3, window_bounds = array<i64: 1, 16, 16, 64>}]} {
    %c0_i32 = arith.constant 0 : i32
    %0 = arith.cmpi eq, %arg1, %c0_i32 : i32
    %1 = arith.extui %0 : i1 to i32
    %c0_i32_0 = arith.constant 0 : i32
    %2 = arith.cmpi ne, %1, %c0_i32_0 : i32
    scf.if %2 {
      %cst_70 = arith.constant 0.000000e+00 : bf16
      %101 = vector.broadcast %cst_70 : bf16 to vector<18x16x3xbf16>
      %c0_71 = arith.constant 0 : index
      %c0_72 = arith.constant 0 : index
      %c0_73 = arith.constant 0 : index
      %102 = vector.load %arg6[%c0_71, %c0_72, %c0_73] : memref<18x16x3xbf16, #tpu.memory_space<vmem>>, vector<18x16x3xbf16>
      tpu.vector_store %arg6[%c0_71, %c0_72, %c0_73], %101 {strides = array<i32>} : memref<18x16x3xbf16, #tpu.memory_space<vmem>>, vector<18x16x3xbf16>,
      %c0_74 = arith.constant 0 : index
      %c0_75 = arith.constant 0 : index
      %c0_76 = arith.constant 0 : index
      %c0_77 = arith.constant 0 : index
      %103 = vector.load %arg2[%c0_74, %c0_75, %c0_76, %c0_77] : memref<1x16x16x3xbf16, #tpu.memory_space<vmem>>, vector<1x16x16x3xbf16>
      %104 = vector.shape_cast %103 : vector<1x16x16x3xbf16> to vector<16x16x3xbf16>
      %c1_78 = arith.constant 1 : index
      %c0_79 = arith.constant 0 : index
      %c0_80 = arith.constant 0 : index
      %105 = vector.load %arg6[%c1_78, %c0_79, %c0_80] : memref<18x16x3xbf16, #tpu.memory_space<vmem>>, vector<16x16x3xbf16>
      tpu.vector_store %arg6[%c1_78, %c0_79, %c0_80], %104 {strides = array<i32>} : memref<18x16x3xbf16, #tpu.memory_space<vmem>>, vector<16x16x3xbf16>,
    } else {
    }
    %c16_i32 = arith.constant 16 : i32
    %3 = arith.muli %arg1, %c16_i32 : i32
    %4 = tpu.iota {dimensions = array<i32: 1>} : vector<16x16x3xi32>
    %c0_i32_1 = arith.constant 0 : i32
    %5 = vector.broadcast %c0_i32_1 : i32 to vector<16x16x3xi32>
    %6 = arith.cmpi eq, %4, %5 : vector<16x16x3xi32>
    %c15_i32 = arith.constant 15 : i32
    %7 = vector.broadcast %c15_i32 : i32 to vector<16x16x3xi32>
    %8 = arith.cmpi eq, %4, %7 : vector<16x16x3xi32>
    %cst = arith.constant 0.000000e+00 : f32
    %9 = vector.broadcast %cst : f32 to vector<256x64xf32>
    %c0_i32_2 = arith.constant 0 : i32
    %10 = arith.addi %3, %c0_i32_2 : i32
    %11 = arith.index_cast %10 : i32 to index
    %c0 = arith.constant 0 : index
    %c0_3 = arith.constant 0 : index
    %12 = vector.load %arg6[%11, %c0, %c0_3] : memref<18x16x3xbf16, #tpu.memory_space<vmem>>, vector<16x16x3xbf16>
    %13 = arith.extf %12 : vector<16x16x3xbf16> to vector<16x16x3xf32>
    %c1_i32 = arith.constant 1 : i32
    %14 = tpu.dynamic_rotate %13 by %c1_i32 dim 1 : vector<16x16x3xf32>, i32 -> vector<16x16x3xf32>
    %cst_4 = arith.constant 0.000000e+00 : f32
    %15 = vector.broadcast %cst_4 : f32 to vector<16x16x3xf32>
    %16 = arith.select %6, %15, %14 : vector<16x16x3xi1>, vector<16x16x3xf32>
    %17 = arith.truncf %16 : vector<16x16x3xf32> to vector<16x16x3xbf16>
    %c15_i32_5 = arith.constant 15 : i32
    %18 = tpu.dynamic_rotate %13 by %c15_i32_5 dim 1 : vector<16x16x3xf32>, i32 -> vector<16x16x3xf32>
    %cst_6 = arith.constant 0.000000e+00 : f32
    %19 = vector.broadcast %cst_6 : f32 to vector<16x16x3xf32>
    %20 = arith.select %8, %19, %18 : vector<16x16x3xi1>, vector<16x16x3xf32>
    %21 = arith.truncf %20 : vector<16x16x3xf32> to vector<16x16x3xbf16>
    %22 = vector.shape_cast %17 : vector<16x16x3xbf16> to vector<256x3xbf16>
    %c0_7 = arith.constant 0 : index
    %c0_8 = arith.constant 0 : index
    %c0_9 = arith.constant 0 : index
    %c0_10 = arith.constant 0 : index
    %23 = vector.load %arg3[%c0_7, %c0_8, %c0_9, %c0_10] : memref<3x3x3x64xbf16, #tpu.memory_space<vmem>>, vector<1x1x3x64xbf16>
    %24 = vector.shape_cast %23 : vector<1x1x3x64xbf16> to vector<3x64xbf16>
    %cst_11 = arith.constant dense<0.000000e+00> : vector<256x64xf32>
    %25 = tpu.matmul %22, %24, %cst_11 {dimension_numbers = #tpu.dot_dimension_numbers<[1], [0], [0], [1], [0, 0, 1, 1], [], []>} : vector<256x3xbf16>, vector<3x64xbf16>, vector<256x64xf32> -> vector<256x64xf32>
    %26 = arith.addf %9, %25 : vector<256x64xf32>
    %27 = vector.shape_cast %12 : vector<16x16x3xbf16> to vector<256x3xbf16>
    %c0_12 = arith.constant 0 : index
    %c1 = arith.constant 1 : index
    %c0_13 = arith.constant 0 : index
    %c0_14 = arith.constant 0 : index
    %28 = vector.load %arg3[%c0_12, %c1, %c0_13, %c0_14] : memref<3x3x3x64xbf16, #tpu.memory_space<vmem>>, vector<1x1x3x64xbf16>
    %29 = vector.shape_cast %28 : vector<1x1x3x64xbf16> to vector<3x64xbf16>
    %cst_15 = arith.constant dense<0.000000e+00> : vector<256x64xf32>
    %30 = tpu.matmul %27, %29, %cst_15 {dimension_numbers = #tpu.dot_dimension_numbers<[1], [0], [0], [1], [0, 0, 1, 1], [], []>} : vector<256x3xbf16>, vector<3x64xbf16>, vector<256x64xf32> -> vector<256x64xf32>
    %31 = arith.addf %26, %30 : vector<256x64xf32>
    %32 = vector.shape_cast %21 : vector<16x16x3xbf16> to vector<256x3xbf16>
    %c0_16 = arith.constant 0 : index
    %c2 = arith.constant 2 : index
    %c0_17 = arith.constant 0 : index
    %c0_18 = arith.constant 0 : index
    %33 = vector.load %arg3[%c0_16, %c2, %c0_17, %c0_18] : memref<3x3x3x64xbf16, #tpu.memory_space<vmem>>, vector<1x1x3x64xbf16>
    %34 = vector.shape_cast %33 : vector<1x1x3x64xbf16> to vector<3x64xbf16>
    %cst_19 = arith.constant dense<0.000000e+00> : vector<256x64xf32>
    %35 = tpu.matmul %32, %34, %cst_19 {dimension_numbers = #tpu.dot_dimension_numbers<[1], [0], [0], [1], [0, 0, 1, 1], [], []>} : vector<256x3xbf16>, vector<3x64xbf16>, vector<256x64xf32> -> vector<256x64xf32>
    %36 = arith.addf %31, %35 : vector<256x64xf32>
    %c1_i32_20 = arith.constant 1 : i32
    %37 = arith.addi %3, %c1_i32_20 : i32
    %38 = arith.index_cast %37 : i32 to index
    %c0_21 = arith.constant 0 : index
    %c0_22 = arith.constant 0 : index
    %39 = vector.load %arg6[%38, %c0_21, %c0_22] : memref<18x16x3xbf16, #tpu.memory_space<vmem>>, vector<16x16x3xbf16>
    %40 = arith.extf %39 : vector<16x16x3xbf16> to vector<16x16x3xf32>
    %c1_i32_23 = arith.constant 1 : i32
    %41 = tpu.dynamic_rotate %40 by %c1_i32_23 dim 1 : vector<16x16x3xf32>, i32 -> vector<16x16x3xf32>
    %cst_24 = arith.constant 0.000000e+00 : f32
    %42 = vector.broadcast %cst_24 : f32 to vector<16x16x3xf32>
    %43 = arith.select %6, %42, %41 : vector<16x16x3xi1>, vector<16x16x3xf32>
    %44 = arith.truncf %43 : vector<16x16x3xf32> to vector<16x16x3xbf16>
    %c15_i32_25 = arith.constant 15 : i32
    %45 = tpu.dynamic_rotate %40 by %c15_i32_25 dim 1 : vector<16x16x3xf32>, i32 -> vector<16x16x3xf32>
    %cst_26 = arith.constant 0.000000e+00 : f32
    %46 = vector.broadcast %cst_26 : f32 to vector<16x16x3xf32>
    %47 = arith.select %8, %46, %45 : vector<16x16x3xi1>, vector<16x16x3xf32>
    %48 = arith.truncf %47 : vector<16x16x3xf32> to vector<16x16x3xbf16>
    %49 = vector.shape_cast %44 : vector<16x16x3xbf16> to vector<256x3xbf16>
    %c1_27 = arith.constant 1 : index
    %c0_28 = arith.constant 0 : index
    %c0_29 = arith.constant 0 : index
    %c0_30 = arith.constant 0 : index
    %50 = vector.load %arg3[%c1_27, %c0_28, %c0_29, %c0_30] : memref<3x3x3x64xbf16, #tpu.memory_space<vmem>>, vector<1x1x3x64xbf16>
    %51 = vector.shape_cast %50 : vector<1x1x3x64xbf16> to vector<3x64xbf16>
    %cst_31 = arith.constant dense<0.000000e+00> : vector<256x64xf32>
    %52 = tpu.matmul %49, %51, %cst_31 {dimension_numbers = #tpu.dot_dimension_numbers<[1], [0], [0], [1], [0, 0, 1, 1], [], []>} : vector<256x3xbf16>, vector<3x64xbf16>, vector<256x64xf32> -> vector<256x64xf32>
    %53 = arith.addf %36, %52 : vector<256x64xf32>
    %54 = vector.shape_cast %39 : vector<16x16x3xbf16> to vector<256x3xbf16>
    %c1_32 = arith.constant 1 : index
    %c1_33 = arith.constant 1 : index
    %c0_34 = arith.constant 0 : index
    %c0_35 = arith.constant 0 : index
    %55 = vector.load %arg3[%c1_32, %c1_33, %c0_34, %c0_35] : memref<3x3x3x64xbf16, #tpu.memory_space<vmem>>, vector<1x1x3x64xbf16>
    %56 = vector.shape_cast %55 : vector<1x1x3x64xbf16> to vector<3x64xbf16>
    %cst_36 = arith.constant dense<0.000000e+00> : vector<256x64xf32>
    %57 = tpu.matmul %54, %56, %cst_36 {dimension_numbers = #tpu.dot_dimension_numbers<[1], [0], [0], [1], [0, 0, 1, 1], [], []>} : vector<256x3xbf16>, vector<3x64xbf16>, vector<256x64xf32> -> vector<256x64xf32>
    %58 = arith.addf %53, %57 : vector<256x64xf32>
    %59 = vector.shape_cast %48 : vector<16x16x3xbf16> to vector<256x3xbf16>
    %c1_37 = arith.constant 1 : index
    %c2_38 = arith.constant 2 : index
    %c0_39 = arith.constant 0 : index
    %c0_40 = arith.constant 0 : index
    %60 = vector.load %arg3[%c1_37, %c2_38, %c0_39, %c0_40] : memref<3x3x3x64xbf16, #tpu.memory_space<vmem>>, vector<1x1x3x64xbf16>
    %61 = vector.shape_cast %60 : vector<1x1x3x64xbf16> to vector<3x64xbf16>
    %cst_41 = arith.constant dense<0.000000e+00> : vector<256x64xf32>
    %62 = tpu.matmul %59, %61, %cst_41 {dimension_numbers = #tpu.dot_dimension_numbers<[1], [0], [0], [1], [0, 0, 1, 1], [], []>} : vector<256x3xbf16>, vector<3x64xbf16>, vector<256x64xf32> -> vector<256x64xf32>
    %63 = arith.addf %58, %62 : vector<256x64xf32>
    %c2_i32 = arith.constant 2 : i32
    %64 = arith.addi %3, %c2_i32 : i32
    %65 = arith.index_cast %64 : i32 to index
    %c0_42 = arith.constant 0 : index
    %c0_43 = arith.constant 0 : index
    %66 = vector.load %arg6[%65, %c0_42, %c0_43] : memref<18x16x3xbf16, #tpu.memory_space<vmem>>, vector<16x16x3xbf16>
    %67 = arith.extf %66 : vector<16x16x3xbf16> to vector<16x16x3xf32>
    %c1_i32_44 = arith.constant 1 : i32
    %68 = tpu.dynamic_rotate %67 by %c1_i32_44 dim 1 : vector<16x16x3xf32>, i32 -> vector<16x16x3xf32>
    %cst_45 = arith.constant 0.000000e+00 : f32
    %69 = vector.broadcast %cst_45 : f32 to vector<16x16x3xf32>
    %70 = arith.select %6, %69, %68 : vector<16x16x3xi1>, vector<16x16x3xf32>
    %71 = arith.truncf %70 : vector<16x16x3xf32> to vector<16x16x3xbf16>
    %c15_i32_46 = arith.constant 15 : i32
    %72 = tpu.dynamic_rotate %67 by %c15_i32_46 dim 1 : vector<16x16x3xf32>, i32 -> vector<16x16x3xf32>
    %cst_47 = arith.constant 0.000000e+00 : f32
    %73 = vector.broadcast %cst_47 : f32 to vector<16x16x3xf32>
    %74 = arith.select %8, %73, %72 : vector<16x16x3xi1>, vector<16x16x3xf32>
    %75 = arith.truncf %74 : vector<16x16x3xf32> to vector<16x16x3xbf16>
    %76 = vector.shape_cast %71 : vector<16x16x3xbf16> to vector<256x3xbf16>
    %c2_48 = arith.constant 2 : index
    %c0_49 = arith.constant 0 : index
    %c0_50 = arith.constant 0 : index
    %c0_51 = arith.constant 0 : index
    %77 = vector.load %arg3[%c2_48, %c0_49, %c0_50, %c0_51] : memref<3x3x3x64xbf16, #tpu.memory_space<vmem>>, vector<1x1x3x64xbf16>
    %78 = vector.shape_cast %77 : vector<1x1x3x64xbf16> to vector<3x64xbf16>
    %cst_52 = arith.constant dense<0.000000e+00> : vector<256x64xf32>
    %79 = tpu.matmul %76, %78, %cst_52 {dimension_numbers = #tpu.dot_dimension_numbers<[1], [0], [0], [1], [0, 0, 1, 1], [], []>} : vector<256x3xbf16>, vector<3x64xbf16>, vector<256x64xf32> -> vector<256x64xf32>
    %80 = arith.addf %63, %79 : vector<256x64xf32>
    %81 = vector.shape_cast %66 : vector<16x16x3xbf16> to vector<256x3xbf16>
    %c2_53 = arith.constant 2 : index
    %c1_54 = arith.constant 1 : index
    %c0_55 = arith.constant 0 : index
    %c0_56 = arith.constant 0 : index
    %82 = vector.load %arg3[%c2_53, %c1_54, %c0_55, %c0_56] : memref<3x3x3x64xbf16, #tpu.memory_space<vmem>>, vector<1x1x3x64xbf16>
    %83 = vector.shape_cast %82 : vector<1x1x3x64xbf16> to vector<3x64xbf16>
    %cst_57 = arith.constant dense<0.000000e+00> : vector<256x64xf32>
    %84 = tpu.matmul %81, %83, %cst_57 {dimension_numbers = #tpu.dot_dimension_numbers<[1], [0], [0], [1], [0, 0, 1, 1], [], []>} : vector<256x3xbf16>, vector<3x64xbf16>, vector<256x64xf32> -> vector<256x64xf32>
    %85 = arith.addf %80, %84 : vector<256x64xf32>
    %86 = vector.shape_cast %75 : vector<16x16x3xbf16> to vector<256x3xbf16>
    %c2_58 = arith.constant 2 : index
    %c2_59 = arith.constant 2 : index
    %c0_60 = arith.constant 0 : index
    %c0_61 = arith.constant 0 : index
    %87 = vector.load %arg3[%c2_58, %c2_59, %c0_60, %c0_61] : memref<3x3x3x64xbf16, #tpu.memory_space<vmem>>, vector<1x1x3x64xbf16>
    %88 = vector.shape_cast %87 : vector<1x1x3x64xbf16> to vector<3x64xbf16>
    %cst_62 = arith.constant dense<0.000000e+00> : vector<256x64xf32>
    %89 = tpu.matmul %86, %88, %cst_62 {dimension_numbers = #tpu.dot_dimension_numbers<[1], [0], [0], [1], [0, 0, 1, 1], [], []>} : vector<256x3xbf16>, vector<3x64xbf16>, vector<256x64xf32> -> vector<256x64xf32>
    %90 = arith.addf %85, %89 : vector<256x64xf32>
    %c0_63 = arith.constant 0 : index
    %c0_64 = arith.constant 0 : index
    %91 = vector.load %arg4[%c0_63, %c0_64] : memref<1x64xf32, #tpu.memory_space<vmem>>, vector<1x64xf32>
    %92 = vector.broadcast %91 : vector<1x64xf32> to vector<256x64xf32>
    %93 = arith.addf %90, %92 : vector<256x64xf32>
    %cst_65 = arith.constant 0.000000e+00 : f32
    %94 = vector.broadcast %cst_65 : f32 to vector<256x64xf32>
    %95 = arith.maximumf %93, %94 : vector<256x64xf32>
    %96 = vector.shape_cast %95 : vector<256x64xf32> to vector<16x16x64xf32>
    %97 = arith.truncf %96 : vector<16x16x64xf32> to vector<16x16x64xbf16>
    %c0_66 = arith.constant 0 : index
    %c0_67 = arith.constant 0 : index
    %c0_68 = arith.constant 0 : index
    %c0_69 = arith.constant 0 : index
    %98 = vector.load %arg5[%c0_66, %c0_67, %c0_68, %c0_69] : memref<1x16x16x64xbf16, #tpu.memory_space<vmem>>, vector<1x16x16x64xbf16>
    %99 = vector.shape_cast %98 : vector<1x16x16x64xbf16> to vector<16x16x64xbf16>
    %100 = vector.shape_cast %97 : vector<16x16x64xbf16> to vector<1x16x16x64xbf16>
    tpu.vector_store %arg5[%c0_66, %c0_67, %c0_68, %c0_69], %100 {strides = array<i32>} : memref<1x16x16x64xbf16, #tpu.memory_space<vmem>>, vector<1x16x16x64xbf16>,
    return
  }
  func.func @transform_0(%arg0: i32, %arg1: i32) -> (i32, i32, i32, i32) {
    %c0_i32 = arith.constant 0 : i32
    %c0_i32_0 = arith.constant 0 : i32
    %c0_i32_1 = arith.constant 0 : i32
    %c0_i32_2 = arith.constant 0 : i32
    return %arg0, %c0_i32, %c0_i32_0, %c0_i32_1 : i32, i32, i32, i32
  }
  func.func @transform_1(%arg0: i32, %arg1: i32) -> (i32, i32, i32, i32) {
    %c0_i32 = arith.constant 0 : i32
    %c0_i32_0 = arith.constant 0 : i32
    %c0_i32_1 = arith.constant 0 : i32
    %c0_i32_2 = arith.constant 0 : i32
    %c0_i32_3 = arith.constant 0 : i32
    return %c0_i32, %c0_i32_0, %c0_i32_1, %c0_i32_2 : i32, i32, i32, i32
  }
  func.func @transform_2(%arg0: i32, %arg1: i32) -> (i32, i32) {
    %c0_i32 = arith.constant 0 : i32
    %c0_i32_0 = arith.constant 0 : i32
    %c0_i32_1 = arith.constant 0 : i32
    return %c0_i32, %c0_i32_0 : i32, i32
  }
  func.func @transform_3(%arg0: i32, %arg1: i32) -> (i32, i32, i32, i32) {
    %c0_i32 = arith.constant 0 : i32
    %c0_i32_0 = arith.constant 0 : i32
    %c0_i32_1 = arith.constant 0 : i32
    return %arg0, %arg1, %c0_i32, %c0_i32_0 : i32, i32, i32, i32
  }
}

</mosaic_0001>

<bundles_post_ra>
// kernel: tpu_custom_call.1
= control target key start
LH: loop header
LB: loop body
LE: loop exit
PB: predicated region body
PF: predicated region fallthrough
CT: control target
= control target key end

     0   :  { %8 = vsyncpa [#allocation4], 0  ;;  %s6024_s0 = inlined_call_operand.vmem [shape: bf16[2,16,16,3], index: 0, kind: input, shape index: {}]   ;;  %s6025_s1 = inlined_call_operand.vmem [shape: bf16[3,3,3,64], index: 1, kind: input, shape index: {}]   ;;  %s6026_s2 = inlined_call_operand.vmem [shape: f32[1,64], index: 2, kind: input, shape index: {}]   ;;  %s6027_s3 = inlined_call_operand.hbm [shape: bf16[2,16,16,64], index: 3, kind: output, shape index: {}]  }
   0x1   :  { %10 = vsyncpa [#allocation4 + $0x1], 0  ;;  %s4852_s12 = smov 0   ;;  %s4854_s13 = smov 0  }
   0x2   :  { %s4856_s14 = smov 0   ;;  %s4858_s15 = smov 0  }
   0x3   :  { %s4860_s16 = smov 0   ;;  %s4862_s17 = smov 0  }
   0x4 LB: > { %s3673_s18 = sadd.s32 4294967295, %s4825_s17   ;;  %s3674_s19 = sadd.s32 4294967294, %s4825_s17   ;;  %s4825_s17 = sphi %s4862_s17, %s16_s17   ;;  %s4821_s16 = sphi %s4860_s16, %s6074_s16   ;;  %s4817_s15 = sphi %s4858_s15, %s6073_s15   ;;  %s4813_s14 = sphi %s4856_s14, %s6072_s14   ;;  %s4809_s13 = sphi %s4854_s13, %s6071_s13   ;;  %s4805_s12 = sphi %s4852_s12, %s6070_s12  }
   0x5   : > { %s28_s20 = sadd.s32 1, %s4821_s16  ;;  %s105_s21 = sadd.s32 1, %s4813_s14 }
   0x6   : > { %p30_p0 = scmp.ge.s32.totalorder %s28_s20, 2  ;;  %p115_p1 = scmp.ne.s32.totalorder %s4813_s14, %s4809_s13 }
   0x7   : > { %p116_p2 = scmp.eq.s32.totalorder %s3673_s18, 1  ;;  %p121_p3 = scmp.ne.s32.totalorder %s4809_s13, %s4805_s12 }
   0x8   : > { %s6076_s20 = smov (%p30_p0, %s28_s20), 0  ;;  %p122_p5 = scmp.eq.s32.totalorder %s3674_s19, 1 }
   0x9   : > { %p4892_p4 = por %p116_p2, %p115_p1  ;;  %s100_s23 = ssub.s32 %s4821_s16, %s6076_s20 }
   0xa   : > { %p3677_p6 = scmp.ge.s32.totalorder %s4825_s17, 1  ;;  %p103_p7 = scmp.eq.s32.totalorder %s100_s23, 0 }
   0xb   : > { %p4899_p8 = por %p122_p5, %p121_p3  ;;  %p154_p9 = scmp.lt.s32.totalorder %s4825_s17, 3 }
   0xc   : > { %s4905_s25 = scalar_select %p103_p7, %s4813_s14, %s105_s21  }
   0xd   : > { %p155_p10 = pnand %p3677_p6, %p154_p9 }
   0xf   : > { %158 = sbr.rel (%p155_p10) target bundleno = 560 (0x230), region = 32 }
  0x16   : > { %v3697_v0 = vld [vmem:[%s6025_s1 + $0x2] sm:$0x3]  ;;  %vm689_vm0 = vcmask 1040384   ;;  %vm690_vm1 = vcmask 1041408   ;;  %vm189_vm2 = vcmask 23552   ;;  %v4827_v1 = vmov 65535  }
  0x17   : > { %v691_v2 = vsel %vm689_vm0, 4294967295, %v4827_v1  ;;  %v3780_v3 = vld [vmem:[%s6025_s1 + $0x8] sm:$0x3]  ;;  %p178_p11 = scmp.lt.s32.totalorder %s4817_s15, 1  ;;  %v4828_v5 = vmov 0   ;;  %v354_v10 = vlaneseq  ;;  %s175_s5 = sand.u32 1, %s4809_s13  }
  0x18   : > { %v4914_v4 = vsel %vm690_vm1, %v691_v2, 0  ;;  %190 = vst.msk [vmem:[#allocation2] sm:$0xff] %vm189_vm2, %v4828_v5  ;;  %191 = vst.msk [vmem:[#allocation2 + $0x8] sm:$0xff] %vm189_vm2, %v4828_v5  ;;  %v637_v6 = vld [vmem:[%s6025_s1] sm:$0x3]  ;;  %vm3540_vm7 = vcmask 519168  }
  0x19   : > { %192 = vst.msk [vmem:[#allocation2 + $0x10] sm:$0xff] %vm189_vm2, %v4828_v5  ;;  %193 = vst.msk [vmem:[#allocation2 + $0x18] sm:$0xff] %vm189_vm2, %v4828_v5  ;;  %v3797_v7 = vld [vmem:[%s6025_s1 + $0xa] sm:$0x3]  ;;  %v694_v8 = vand.u32 %v3697_v0, %v4914_v4  ;;  %v4942_v9 = vand.u32 %v3780_v3, %v4914_v4  ;;  %s179_s7 = scalar_select %p178_p11, %s4817_s15, 1  ;;  %v906_v11 = vand.u32 %v4914_v4, %v637_v6  ;;  %v4957_v14 = vshrl.u32 %v354_v10, 7 }
  0x1a   : > { %194 = vst.msk [vmem:[#allocation2 + $0x20] sm:$0xff] %vm189_vm2, %v4828_v5  ;;  %195 = vst.msk [vmem:[#allocation2 + $0x28] sm:$0xff] %vm189_vm2, %v4828_v5  ;;  %v2133_v12 = vand.u32 %v3797_v7, %v4914_v4  ;;  %v3830_v22 = vld [vmem:[%s6025_s1 + $0xc] sm:$0x3]  ;;  %v3730_v27 = vld [vmem:[%s6025_s1 + $0x4] sm:$0x3] }
  0x1b   : > { %196 = vst.msk [vmem:[#allocation2 + $0x30] sm:$0xff] %vm189_vm2, %v4828_v5  ;;  %197 = vst.msk [vmem:[#allocation2 + $0x38] sm:$0xff] %vm189_vm2, %v4828_v5  ;;  %4106 = vmatprep.subr.bf16.mxu1 %v694_v8  ;;  %4242 = vmatprep.subr.bf16.mxu0 %v4942_v9  ;;  %s3919_s8 = sshll.u32 %s179_s7, 7  ;;  %v4970_v20 = vadd.s32 8, %v4957_v14  ;;  %vm556_vm3 = vcmp.lt.s32.totalorder %v4957_v14, 7  ;;  %v5004_v34 = vand.u32 %v3830_v22, %v4914_v4  ;;  %vm443_vm5 = vcmp.lt.s32.totalorder %v4957_v14, 1 }
  0x1c   : > { %198 = vst.msk [vmem:[#allocation2 + $0x40] sm:$0xff] %vm189_vm2, %v4828_v5  ;;  %199 = vst.msk [vmem:[#allocation2 + $0x48] sm:$0xff] %vm189_vm2, %v4828_v5  ;;  %4107 = vmatpush3.bf16.msra.mxu1 %v694_v8  ;;  %4243 = vmatpush3.bf16.msra.mxu0 %v4942_v9  ;;  %s4954_s11 = scalar_lea.vmem %s6024_s0, %s3919_s8  ;;  %v5018_v37 = vand.u32 %v3730_v27, %v4914_v4  ;;  %vm357_vm6 = vcmp.eq.s32.totalorder %v4957_v14, 0  ;;  %s3678_s8 = sshll.u32 %s175_s5, 7 }
  0x1d   : > { %200 = vst.msk [vmem:[#allocation2 + $0x50] sm:$0xff] %vm189_vm2, %v4828_v5  ;;  %201 = vst.msk [vmem:[#allocation2 + $0x58] sm:$0xff] %vm189_vm2, %v4828_v5  ;;  %v4729_v13 = vld [vmem:[%s4954_s11] sm:$0xff]   ;;  %4140 = vmatprep.subr.bf16.mxu1 %v906_v11  ;;  %4276 = vmatprep.subr.bf16.mxu0 %v2133_v12  ;;  %v4730_v15 = vld [vmem:[%s4954_s11 + $0x8] sm:$0xff]   ;;  %vm360_vm4 = vcmp.eq.s32.totalorder %v4970_v20, 15  ;;  %s5867_s9 = scalar_lea.vmem [#allocation3], %s3678_s8 }
  0x1e   : > { %202 = vst.msk [vmem:[#allocation2 + $0x60] sm:$0xff] %vm189_vm2, %v4828_v5  ;;  %203 = vst.msk [vmem:[#allocation2 + $0x68] sm:$0xff] %vm189_vm2, %v4828_v5  ;;  %v4731_v19 = vld [vmem:[%s4954_s11 + $0x10] sm:$0xff]   ;;  %v4732_v21 = vld [vmem:[%s4954_s11 + $0x18] sm:$0xff]   ;;  %s3952_s10 = sshll.u32 %s4817_s15, 11  ;;  %s5978_s15 = scalar_lea.sflag [#allocation4], %s175_s5 }
  0x1f   : > { %204 = vst.msk [vmem:[#allocation2 + $0x70] sm:$0xff] %vm189_vm2, %v4828_v5  ;;  %205 = vst.msk [vmem:[#allocation2 + $0x78] sm:$0xff] %vm189_vm2, %v4828_v5  ;;  %v4960_v16 = vld [vmem:[#allocation2] sm:$0xff]  ;;  %v4734_v26 = vld [vmem:[%s4954_s11 + $0x28] sm:$0xff]   ;;  %s5966_s21 = scalar_lea.hbm %s6027_s3, %s3952_s10  ;;  %s4829_s26 = smov [#allocation3]  }
  0x20   : > { %206 = vst.msk [vmem:[#allocation2 + $0x80] sm:$0xff] %vm189_vm2, %v4828_v5  ;;  %207 = vst.msk [vmem:[#allocation2 + $0x88] sm:$0xff] %vm189_vm2, %v4828_v5  ;;  %v379_v17 = vunpack.c.l.bf16 %v4960_v16  ;;  %v380_v18 = vunpack.c.h.bf16 %v4960_v16  ;;  %4108 = vmatprep.mubr.msk.bf16.mxu1 %vm189_vm2, %v4960_v16  ;;  %v4733_v25 = vld [vmem:[%s4954_s11 + $0x20] sm:$0xff]   ;;  %v4735_v28 = vld [vmem:[%s4954_s11 + $0x30] sm:$0xff]   ;;  %s4751_s27 = sshll.u32 %s4829_s26, 4  ;;  %s4752_s27 = int_to_ptr.vmem [resolvable:$false] %s4751_s27 }
  0x21   : > { %337 = vst.msk [vmem:[#allocation2 + $0x8] sm:$0xff] %vm189_vm2, %v4729_v13  ;;  %338 = vst.msk [vmem:[#allocation2 + $0x10] sm:$0xff] %vm189_vm2, %v4730_v15  ;;  %v4736_v31 = vld [vmem:[%s4954_s11 + $0x38] sm:$0xff]   ;;  %v4737_v33 = vld [vmem:[%s4954_s11 + $0x40] sm:$0xff]   ;;  %s4753_s28 = scalar_lea.vmem %s4752_s27, 4096 }
  0x22   : > { %v524_v23 = vrot.slane %v379_v17, 1  ;;  %v540_v24 = vrot.slane %v380_v18, 1  ;;  %339 = vst.msk [vmem:[#allocation2 + $0x18] sm:$0xff] %vm189_vm2, %v4731_v19  ;;  %340 = vst.msk [vmem:[#allocation2 + $0x20] sm:$0xff] %vm189_vm2, %v4732_v21  ;;  %v4738_v39 = vld [vmem:[%s4954_s11 + $0x48] sm:$0xff]   ;;  %v4739_v41 = vld [vmem:[%s4954_s11 + $0x50] sm:$0xff]  }
  0x23   : > { %341 = vst.msk [vmem:[#allocation2 + $0x28] sm:$0xff] %vm189_vm2, %v4733_v25  ;;  %342 = vst.msk [vmem:[#allocation2 + $0x30] sm:$0xff] %vm189_vm2, %v4734_v26  ;;  %v4740_v42 = vld [vmem:[%s4954_s11 + $0x58] sm:$0xff]   ;;  %v4741_v44 = vld [vmem:[%s4954_s11 + $0x60] sm:$0xff]   ;;  %v427_v13 = vrot.slane %v380_v18, 7 }
  0x24   : > { %v4993_v29 = vsel %vm556_vm3, %v524_v23, %v540_v24  ;;  %v573_v30 = vsel %vm556_vm3, %v540_v24, %v524_v23  ;;  %343 = vst.msk [vmem:[#allocation2 + $0x38] sm:$0xff] %vm189_vm2, %v4735_v28  ;;  %344 = vst.msk [vmem:[#allocation2 + $0x40] sm:$0xff] %vm189_vm2, %v4736_v31  ;;  %v4742_v48 = vld [vmem:[%s4954_s11 + $0x68] sm:$0xff]   ;;  %v4743_v49 = vld [vmem:[%s4954_s11 + $0x70] sm:$0xff]  }
  0x25   : > { %v5008_v35 = vsel %vm360_vm4, 0.0, %v573_v30  ;;  %345 = vst.msk [vmem:[#allocation2 + $0x48] sm:$0xff] %vm189_vm2, %v4737_v33  ;;  %346 = vst.msk [vmem:[#allocation2 + $0x50] sm:$0xff] %vm189_vm2, %v4738_v39  ;;  %v4744_v50 = vld [vmem:[%s4954_s11 + $0x78] sm:$0xff]   ;;  %v3847_v26 = vld [vmem:[%s6025_s1 + $0xe] sm:$0x3] }
  0x26   : > { %347 = vst.msk [vmem:[#allocation2 + $0x58] sm:$0xff] %vm189_vm2, %v4739_v41  ;;  %348 = vst.msk [vmem:[#allocation2 + $0x60] sm:$0xff] %vm189_vm2, %v4740_v42  ;;  %v5145_v42 = vand.u32 %v3847_v26, %v4914_v4  ;;  %s3590_s11 = sshll.u32 %s5867_s9, 4  ;;  %s5968_s11 = int_to_ptr.vmem [resolvable:$true] %s3590_s11 }
  0x27   : > { %349 = vst.msk [vmem:[#allocation2 + $0x68] sm:$0xff] %vm189_vm2, %v4741_v44  ;;  %350 = vst.msk [vmem:[#allocation2 + $0x70] sm:$0xff] %vm189_vm2, %v4742_v48  ;;  %s4747_s23 = scalar_lea.vmem %s5968_s11, 2048  ;;  %p4754_p1 = scmp.lt.s32.totalorder %s5968_s11, %s4752_s27 }
  0x28   : > { %v4999_v32 = vld [vmem:[#allocation2 + $0x8] sm:$0xff]  ;;  %v5014_v36 = vld [vmem:[#allocation2 + $0x10] sm:$0xff]  ;;  %351 = vst.msk [vmem:[#allocation2 + $0x78] sm:$0xff] %vm189_vm2, %v4743_v49  ;;  %352 = vst.msk [vmem:[#allocation2 + $0x80] sm:$0xff] %vm189_vm2, %v4744_v50  ;;  %p4748_p12 = scmp.ne.s32.totalorder %s5968_s11, %s4747_s23  ;;  %p4755_p2 = scmp.lt.s32.totalorder %s4753_s28, %s4747_s23 }
  0x29   : > { %4109 = vmatmul.mubr.msk.bf16.vlgmr.msra.gmra.mrb[0].mxu1 %vm189_vm2, %v4999_v32  ;;  %4244 = vmatprep.mubr.msk.bf16.mxu0 %vm189_vm2, %v4999_v32  ;;  %v5028_v40 = vld [vmem:[#allocation2 + $0x18] sm:$0xff]  ;;  %v5039_v43 = vld [vmem:[#allocation2 + $0x20] sm:$0xff]  ;;  %v381_v46 = vunpack.c.l.bf16 %v4999_v32  ;;  %v382_v47 = vunpack.c.h.bf16 %v4999_v32  ;;  %v1336_v54 = vunpack.c.l.bf16 %v5014_v36  ;;  %v1337_v55 = vunpack.c.h.bf16 %v5014_v36 }
  0x2a   : > { %4141 = vmatpush3.bf16.msra.mxu1 %v906_v11  ;;  %4245 = vmatmul.mubr.msk.bf16.vlgmr.msra.gmra.mrb[0].mxu0 %vm189_vm2, %v5014_v36  ;;  %v5042_v45 = vld [vmem:[#allocation2 + $0x28] sm:$0xff]  ;;  %v5061_v53 = vld [vmem:[#allocation2 + $0x30] sm:$0xff]  ;;  %v385_v58 = vunpack.c.l.bf16 %v5028_v40  ;;  %v386_v59 = vunpack.c.h.bf16 %v5028_v40  ;;  %v1340_v6 = vunpack.c.l.bf16 %v5039_v43  ;;  %v1341_v7 = vunpack.c.h.bf16 %v5039_v43  ;;  %p4749_p13 = pnand %p4748_p12, %p4892_p4  ;;  %p4756_p3 = por %p4755_p2, %p4754_p1 }
  0x2b   : > { %4277 = vmatpush3.bf16.msra.mxu0 %v2133_v12  ;;  %4112 = vmatprep.mubr.msk.bf16.mxu1 %vm189_vm2, %v5014_v36  ;;  %6042 = vst [vmem:[#allocation6_spill] sm:$0xff] %v5042_v45  ;;  %v525_v51 = vrot.slane %v381_v46, 1  ;;  %v541_v52 = vrot.slane %v382_v47, 1  ;;  %6043 = vst [vmem:[#allocation7_spill] sm:$0xff] %v5061_v53  ;;  %v5065_v56 = vld [vmem:[#allocation2 + $0x38] sm:$0xff]  ;;  %v1479_v62 = vrot.slane %v1336_v54, 1  ;;  %v389_v8 = vunpack.c.l.bf16 %v5042_v45 }
  0x2c   : > { %4248 = vmatprep.mubr.msk.bf16.mxu0 %vm189_vm2, %v5028_v40  ;;  %4310 = vmatprep.subr.bf16.mxu0 %v5004_v34  ;;  %6044 = vst [vmem:[#allocation8_spill] sm:$0xff] %v5065_v56  ;;  %v1495_v63 = vrot.slane %v1337_v55, 1  ;;  %v527_v0 = vrot.slane %v385_v58, 1  ;;  %v543_v1 = vrot.slane %v386_v59, 1  ;;  %v5089_v3 = vld [vmem:[#allocation2 + $0x40] sm:$0xff]  ;;  %v390_v10 = vunpack.c.h.bf16 %v5042_v45  ;;  %v5134_v31 = vld [vmem:[#allocation2 + $0x48] sm:$0xff]  ;;  %p4750_p0 = pneg %p4749_p13 }
  0x2d   : > { %4174 = vmatprep.subr.bf16.mxu1 %v5018_v37  ;;  %v574_v57 = vsel %vm556_vm3, %v541_v52, %v525_v51  ;;  %v558_v60 = vsel %vm556_vm3, %v525_v51, %v541_v52  ;;  %6045 = vst [vmem:[#allocation9_spill] sm:$0xff] %v5089_v3  ;;  %v411_v12 = vrot.slane %v379_v17, 7  ;;  %v412_v15 = vrot.slane %v381_v46, 7  ;;  %v5138_v33 = vld [vmem:[#allocation2 + $0x50] sm:$0xff] }
  0x2e   : > { %v592_v61 = vsel %vm360_vm4, 0.0, %v574_v57  ;;  %v1527_v5 = vsel %vm556_vm3, %v1495_v63, %v1479_v62  ;;  %v1528_v11 = vsel %vm556_vm3, %v543_v1, %v527_v0  ;;  %v428_v19 = vrot.slane %v382_v47, 7  ;;  %p4757_p5 = pnand %p4756_p3, %p4750_p0 }
  0x2f   : > { %v5087_v2 = vpack.c.bf16 %v592_v61, %v558_v60  ;;  %v1367_v21 = vrot.slane %v1336_v54, 7  ;;  %v1383_v22 = vrot.slane %v1337_v55, 7  ;;  %v1511_v23 = vsel %vm556_vm3, %v1479_v62, %v1495_v63 }
  0x30   : > { %v1545_v24 = vsel %vm360_vm4, 0.0, %v1527_v5  ;;  %v1481_v16 = vrot.slane %v1340_v6, 1  ;;  %v1497_v17 = vrot.slane %v1341_v7, 1  ;;  %v1512_v18 = vsel %vm556_vm3, %v527_v0, %v543_v1 }
  0x31   : > { %4113 = vmatmul.mubr.msk.bf16.gmra.mrb[4].mxu1 %vm189_vm2, %v5028_v40  ;;  %v1547_v25 = vsel %vm360_vm4, 0.0, %v1528_v11  ;;  %v529_v27 = vrot.slane %v389_v8, 1  ;;  %v545_v28 = vrot.slane %v390_v10, 1  ;;  %v5132_v30 = vpack.c.bf16 %v1545_v24, %v1511_v23  ;;  %v5203_v24 = vld [vmem:[#allocation2 + $0x60] sm:$0xff] }
  0x32   : > { %4249 = vmatmul.mubr.msk.bf16.gmra.mrb[4].mxu0 %vm189_vm2, %v5039_v43  ;;  %4116 = vmatprep.mubr.msk.bf16.mxu1 %vm189_vm2, %v5039_v43  ;;  %v461_v32 = vsel %vm443_vm5, %v428_v19, %v412_v15  ;;  %v5140_v39 = vpack.c.bf16 %v1547_v25, %v1512_v18  ;;  %v460_v41 = vsel %vm443_vm5, %v427_v13, %v411_v12  ;;  %v1344_v46 = vunpack.c.l.bf16 %v5061_v53 }
  0x33   : > { %4252 = vmatprep.mubr.msk.bf16.mxu0 %vm189_vm2, %v5042_v45  ;;  %v1415_v44 = vsel %vm443_vm5, %v1383_v22, %v1367_v21  ;;  %v1345_v47 = vunpack.c.h.bf16 %v5061_v53  ;;  %v1529_v48 = vsel %vm556_vm3, %v1497_v17, %v1481_v16  ;;  %v393_v49 = vunpack.c.l.bf16 %v5065_v56 }
  0x34   : > { %v394_v50 = vunpack.c.h.bf16 %v5065_v56  ;;  %v1530_v51 = vsel %vm556_vm3, %v545_v28, %v529_v27  ;;  %v445_v52 = vsel %vm443_vm5, %v412_v15, %v428_v19  ;;  %v478_v54 = vsel %vm357_vm6, 0.0, %v461_v32  ;;  %v5195_v19 = vld [vmem:[#allocation2 + $0x58] sm:$0xff] }
  0x35   : > { %v5169_v55 = vsel %vm443_vm5, %v411_v12, %v427_v13  ;;  %v5173_v57 = vsel %vm357_vm6, 0.0, %v460_v41  ;;  %v1399_v60 = vsel %vm443_vm5, %v1367_v21, %v1383_v22  ;;  %v1432_v61 = vsel %vm357_vm6, 0.0, %v1415_v44 }
  0x36   : > { %v1513_v62 = vsel %vm556_vm3, %v1481_v16, %v1497_v17  ;;  %v1549_v63 = vsel %vm360_vm4, 0.0, %v1529_v48  ;;  %v1483_v0 = vrot.slane %v1344_v46, 1  ;;  %v1499_v1 = vrot.slane %v1345_v47, 1 }
  0x37   : > { %v1514_v5 = vsel %vm556_vm3, %v529_v27, %v545_v28  ;;  %v1551_v11 = vsel %vm360_vm4, 0.0, %v1530_v51  ;;  %v547_v12 = vrot.slane %v394_v50, 1  ;;  %v1348_v13 = vunpack.c.l.bf16 %v5089_v3 }
  0x38   : > { %v1349_v15 = vunpack.c.h.bf16 %v5089_v3  ;;  %v5197_v21 = vpack.c.bf16 %v1549_v63, %v1513_v62  ;;  %v5199_v22 = vpack.c.bf16 %v445_v52, %v478_v54  ;;  %v5201_v23 = vpack.c.bf16 %v1399_v60, %v1432_v61 }
  0x39   : > { %4117 = vmatmul.mubr.msk.bf16.gmra.mrb[8].mxu1 %vm189_vm2, %v5042_v45  ;;  %v5205_v16 = vpack.c.bf16 %v1551_v11, %v1514_v5  ;;  %v5211_v18 = vrot.slane %v385_v58, 7  ;;  %v5215_v25 = vrot.slane %v386_v59, 7  ;;  %v5219_v26 = vrot.slane %v1340_v6, 7 }
  0x3a   : > { %4253 = vmatmul.mubr.msk.bf16.gmra.mrb[8].mxu0 %vm189_vm2, %v5061_v53  ;;  %4120 = vmatprep.mubr.msk.bf16.mxu1 %vm189_vm2, %v5061_v53  ;;  %v1531_v27 = vsel %vm556_vm3, %v1499_v1, %v1483_v0  ;;  %v5225_v28 = vrot.slane %v1341_v7, 7  ;;  %v6029_v32 = vunpack.c.l.bf16 %v5134_v31  ;;  %v6028_v58 = vunpack.c.h.bf16 %v5134_v31 }
  0x3b   : > { %4256 = vmatprep.mubr.msk.bf16.mxu0 %vm189_vm2, %v5065_v56  ;;  %v5235_v6 = vrot.slane %v389_v8, 7  ;;  %v5239_v41 = vrot.slane %v390_v10, 7  ;;  %v1485_v7 = vrot.slane %v1348_v13, 1  ;;  %v1501_v44 = vrot.slane %v1349_v15, 1 }
  0x3c   : > { %v6030_v48 = vunpack.c.l.bf16 %v5138_v33  ;;  %v6031_v51 = vunpack.c.h.bf16 %v5138_v33  ;;  %v1515_v8 = vsel %vm556_vm3, %v1483_v0, %v1499_v1  ;;  %v1553_v10 = vsel %vm360_vm4, 0.0, %v1531_v27 }
  0x3d   : > { %v6033_v52 = vunpack.c.l.bf16 %v5195_v19  ;;  %v6032_v54 = vunpack.c.h.bf16 %v5195_v19  ;;  %v5259_v62 = vrot.slane %v1344_v46, 7  ;;  %v5261_v63 = vrot.slane %v1345_v47, 7 }
  0x3e   : > { %v533_v0 = vrot.slane %v6029_v32, 1  ;;  %v549_v1 = vrot.slane %v6028_v58, 1  ;;  %v5267_v5 = vrot.slane %v393_v49, 7  ;;  %v6034_v11 = vunpack.c.l.bf16 %v5203_v24 }
  0x3f   : > { %v6035_v27 = vunpack.c.h.bf16 %v5203_v24  ;;  %v5277_v46 = vrot.slane %v394_v50, 7  ;;  %v534_v47 = vrot.slane %v6030_v48, 1  ;;  %v5287_v58 = vrot.slane %v1348_v13, 7 }
  0x40   : > { %v1533_v50 = vsel %vm556_vm3, %v1501_v44, %v1485_v7  ;;  %v5295_v32 = vrot.slane %v1349_v15, 7  ;;  %v1534_v13 = vsel %vm556_vm3, %v549_v1, %v533_v0 }
  0x41   : > { %4121 = vmatmul.mubr.msk.bf16.gmra.mrb[12].mxu1 %vm189_vm2, %v5065_v56  ;;  %v1559_v48 = vsel %vm360_vm4, 0.0, %v1534_v13 }
  0x42   : > { %4257 = vmatmul.mubr.msk.bf16.gmra.mrb[12].mxu0 %vm189_vm2, %v5089_v3  ;;  %4124 = vmatprep.mubr.msk.bf16.mxu1 %vm189_vm2, %v5089_v3 }
  0x43   : > { %4278 = vmatprep.mubr.msk.bf16.mxu0 %vm189_vm2, %v5087_v2 }
  0x49   : > { %4125 = vmatmul.mubr.msk.bf16.gmra.mrb[16].mxu1 %vm189_vm2, %v5134_v31 }
  0x4a   : > { %4279 = vmatmul.mubr.msk.bf16.vlgmr.msra.gmra.mrb[0].mxu0 %vm189_vm2, %v5132_v30  ;;  %4128 = vmatprep.mubr.msk.bf16.mxu1 %vm189_vm2, %v5138_v33 }
  0x4b   : > { %4311 = vmatpush3.bf16.msra.mxu0 %v5004_v34  ;;  %4282 = vmatprep.mubr.msk.bf16.mxu0 %vm189_vm2, %v5140_v39  ;;  %v531_v34 = vrot.slane %v393_v49, 1  ;;  %v5283_v49 = vld [vmem:[#allocation2 + $0x70] sm:$0xff] }
  0x4c   : > { %4344 = vmatprep.subr.bf16.mxu0 %v5145_v42 }
  0x4d   : > { %v1532_v59 = vsel %vm556_vm3, %v547_v12, %v531_v34  ;;  %v1516_v60 = vsel %vm556_vm3, %v531_v34, %v547_v12  ;;  %v5271_v34 = vld [vmem:[#allocation2 + $0x68] sm:$0xff]  ;;  %v5273_v12 = vpack.c.bf16 %v1553_v10, %v1515_v8  ;;  %v535_v8 = vrot.slane %v6033_v52, 1  ;;  %v5313_v52 = vld [vmem:[#allocation2 + $0x78] sm:$0xff] }
  0x4e   : > { %v1555_v61 = vsel %vm360_vm4, 0.0, %v1532_v59  ;;  %v550_v59 = vrot.slane %v6031_v51, 1  ;;  %v551_v10 = vrot.slane %v6032_v54, 1  ;;  %v463_v54 = vsel %vm443_vm5, %v5215_v25, %v5211_v18 }
  0x4f   : > { %v5285_v38 = vpack.c.bf16 %v1555_v61, %v1516_v60  ;;  %v536_v60 = vrot.slane %v6034_v11, 1  ;;  %v552_v61 = vrot.slane %v6035_v27, 1  ;;  %v1517_v11 = vsel %vm556_vm3, %v1485_v7, %v1501_v44 }
  0x50   : > { %v1557_v27 = vsel %vm360_vm4, 0.0, %v1533_v50  ;;  %v1535_v17 = vsel %vm556_vm3, %v550_v59, %v534_v47  ;;  %v1518_v51 = vsel %vm556_vm3, %v533_v0, %v549_v1  ;;  %v1536_v7 = vsel %vm556_vm3, %v551_v10, %v535_v8 }
  0x51   : > { %4129 = vmatmul.mubr.msk.bf16.gmra.mrb[20].mxu1 %vm189_vm2, %v5195_v19  ;;  %v6046_v44 = vunpack.c.l.bf16 %v5271_v34  ;;  %v6047_v3 = vunpack.c.h.bf16 %v5271_v34  ;;  %v410_v53 = vunpack.c.h.bf16 %v5313_v52  ;;  %v1519_v15 = vsel %vm556_vm3, %v534_v47, %v550_v59 }
  0x52   : > { %4283 = vmatmul.mubr.msk.bf16.gmra.mrb[4].mxu0 %vm189_vm2, %v5197_v21  ;;  %4132 = vmatprep.mubr.msk.bf16.mxu1 %vm189_vm2, %v5203_v24  ;;  %v5341_v45 = vpack.c.bf16 %v1557_v27, %v1517_v11  ;;  %v1561_v0 = vsel %vm360_vm4, 0.0, %v1535_v17  ;;  %v447_v1 = vsel %vm443_vm5, %v5211_v18, %v5215_v25  ;;  %v482_v13 = vsel %vm357_vm6, 0.0, %v463_v54 }
  0x53   : > { %4286 = vmatprep.mubr.msk.bf16.mxu0 %vm189_vm2, %v5205_v16  ;;  %v537_v50 = vrot.slane %v6046_v44, 1  ;;  %v553_v56 = vrot.slane %v6047_v3, 1  ;;  %v5351_v44 = vpack.c.bf16 %v1559_v48, %v1518_v51  ;;  %v1520_v3 = vsel %vm556_vm3, %v535_v8, %v551_v10 }
  0x54   : > { %v1563_v11 = vsel %vm360_vm4, 0.0, %v1536_v7  ;;  %v1537_v27 = vsel %vm556_vm3, %v552_v61, %v536_v60  ;;  %v6048_v17 = vunpack.c.l.bf16 %v5283_v49  ;;  %v6049_v59 = vunpack.c.h.bf16 %v5283_v49 }
  0x55   : > { %v6050_v25 = vunpack.c.l.bf16 %v5313_v52  ;;  %v464_v48 = vsel %vm443_vm5, %v5225_v28, %v5219_v26  ;;  %v555_v51 = vrot.slane %v410_v53, 1  ;;  %v5373_v8 = vpack.c.bf16 %v1561_v0, %v1519_v15 }
  0x56   : > { %v538_v47 = vrot.slane %v6048_v17, 1  ;;  %v554_v18 = vrot.slane %v6049_v59, 1  ;;  %v5375_v10 = vpack.c.bf16 %v447_v1, %v482_v13  ;;  %v1521_v7 = vsel %vm556_vm3, %v536_v60, %v552_v61 }
  0x57   : > { %v539_v54 = vrot.slane %v6050_v25, 1  ;;  %v6051_v17 = vpack.c.bf16 %v5169_v55, %v5173_v57  ;;  %v5385_v59 = vpack.c.bf16 %v1563_v11, %v1520_v3  ;;  %v1565_v25 = vsel %vm360_vm4, 0.0, %v1537_v27  ;;  %v5440_v27 = vld [vmem:[#allocation2 + $0x80] sm:$0xff] }
  0x58   : > { %v448_v15 = vsel %vm443_vm5, %v5219_v26, %v5225_v28  ;;  %v449_v60 = vsel %vm443_vm5, %v5235_v6, %v5239_v41  ;;  %v484_v55 = vsel %vm357_vm6, 0.0, %v464_v48  ;;  %v465_v57 = vsel %vm443_vm5, %v5239_v41, %v5235_v6  ;;  %v3763_v26 = vld [vmem:[%s6025_s1 + $0x6] sm:$0x3] }
  0x59   : > { %4133 = vmatmul.mubr.msk.bf16.gmra.mrb[24].mxu1 %vm189_vm2, %v5271_v34  ;;  %v1538_v61 = vsel %vm556_vm3, %v553_v56, %v537_v50  ;;  %v1522_v28 = vsel %vm556_vm3, %v537_v50, %v553_v56  ;;  %v1539_v1 = vsel %vm556_vm3, %v554_v18, %v538_v47  ;;  %v5417_v13 = vand.u32 %v3763_v26, %v4914_v4 }
  0x5a   : > { %4287 = vmatmul.mubr.msk.bf16.gmra.mrb[8].mxu0 %vm189_vm2, %v5273_v12  ;;  %4136 = vmatprep.mubr.msk.bf16.mxu1 %vm189_vm2, %v5283_v49  ;;  %v1567_v0 = vsel %vm360_vm4, 0.0, %v1538_v61  ;;  %v5421_v6 = vpack.c.bf16 %v1565_v25, %v1521_v7  ;;  %v5423_v41 = vpack.c.bf16 %v448_v15, %v484_v55  ;;  %v466_v56 = vsel %vm443_vm5, %v5261_v63, %v5259_v62 }
  0x5b   : > { %4290 = vmatprep.mubr.msk.bf16.mxu0 %vm189_vm2, %v5285_v38  ;;  %v486_v50 = vsel %vm357_vm6, 0.0, %v465_v57  ;;  %v1523_v3 = vsel %vm556_vm3, %v538_v47, %v554_v18  ;;  %v450_v11 = vsel %vm443_vm5, %v5259_v62, %v5261_v63  ;;  %v1569_v48 = vsel %vm360_vm4, 0.0, %v1539_v1 }
  0x5c   : > { %v488_v47 = vsel %vm357_vm6, 0.0, %v466_v56  ;;  %v1540_v18 = vsel %vm556_vm3, %v555_v51, %v539_v54  ;;  %v1364_v62 = vunpack.c.l.bf16 %v5440_v27  ;;  %v1365_v63 = vunpack.c.h.bf16 %v5440_v27 }
  0x5d   : > { %v572_v7 = vsel %vm556_vm3, %v539_v54, %v555_v51  ;;  %v5467_v25 = vpack.c.bf16 %v1569_v48, %v1523_v3  ;;  %v5477_v51 = vpack.c.bf16 %v449_v60, %v486_v50  ;;  %v5479_v57 = vpack.c.bf16 %v450_v11, %v488_v47 }
  0x5e   : > { %v1493_v15 = vrot.slane %v1364_v62, 1  ;;  %v1509_v54 = vrot.slane %v1365_v63, 1  ;;  %v467_v61 = vsel %vm443_vm5, %v5277_v46, %v5267_v5  ;;  %v6053_v60 = vunpack.c.h.bf16 %v5134_v31 }
  0x5f   : > { %v451_v50 = vsel %vm443_vm5, %v5267_v5, %v5277_v46  ;;  %v490_v3 = vsel %vm357_vm6, 0.0, %v467_v61  ;;  %v452_v11 = vsel %vm443_vm5, %v5287_v58, %v5295_v32  ;;  %v6054_v47 = vunpack.c.l.bf16 %v5138_v33 }
  0x60   : > { %v1541_v26 = vsel %vm556_vm3, %v1509_v54, %v1493_v15  ;;  %v436_v56 = vrot.slane %v6053_v60, 7  ;;  %v1525_v5 = vsel %vm556_vm3, %v1493_v15, %v1509_v54 }
  0x61   : > { %4137 = vmatmul.mubr.msk.bf16.gmra.mrb[28].mxu1 %vm189_vm2, %v5313_v52  ;;  %v1573_v46 = vsel %vm360_vm4, 0.0, %v1541_v26 }
  0x62   : > { %4291 = vmatmul.mubr.msk.bf16.gmra.mrb[12].mxu0 %vm189_vm2, %v5341_v45  ;;  %4142 = vmatprep.mubr.msk.bf16.mxu1 %vm189_vm2, %v6051_v17  ;;  %v1571_v17 = vsel %vm360_vm4, 0.0, %v1540_v18  ;;  %v421_v18 = vrot.slane %v6054_v47, 7 }
  0x63   : > { %4294 = vmatprep.mubr.msk.bf16.mxu0 %vm189_vm2, %v5351_v44  ;;  %v5473_v55 = vpack.c.bf16 %v1571_v17, %v572_v7  ;;  %v6055_v7 = vunpack.c.h.bf16 %v5138_v33 }
  0x65   : > { %v437_v17 = vrot.slane %v6055_v7, 7  ;;  %v3864_v7 = vld [vmem:[%s6025_s1 + $0x10] sm:$0x3] }
  0x67   : > { %v470_v54 = vsel %vm443_vm5, %v437_v17, %v421_v18 }
  0x69   : > { %4143 = vmatmul.mubr.msk.bf16.vlgmr.msra.gmra.mrb[0].mxu1 %vm189_vm2, %v5199_v22 }
  0x6a   : > { %4175 = vmatpush3.bf16.msra.mxu1 %v5018_v37  ;;  %4295 = vmatmul.mubr.msk.bf16.gmra.mrb[16].mxu0 %vm189_vm2, %v5373_v8  ;;  %v5446_v37 = vpack.c.bf16 %v1567_v0, %v1522_v28  ;;  %v468_v28 = vsel %vm443_vm5, %v5295_v32, %v5287_v58  ;;  %v6052_v0 = vunpack.c.l.bf16 %v5134_v31  ;;  %v5525_v32 = vpack.c.bf16 %v451_v50, %v490_v3 }
  0x6b   : > { %4146 = vmatprep.mubr.msk.bf16.mxu1 %vm189_vm2, %v5201_v23  ;;  %4298 = vmatprep.mubr.msk.bf16.mxu0 %vm189_vm2, %v5385_v59  ;;  %v492_v48 = vsel %vm357_vm6, 0.0, %v468_v28  ;;  %v5527_v58 = vpack.c.bf16 %v1573_v46, %v1525_v5  ;;  %v6057_v50 = vunpack.c.h.bf16 %v5195_v19  ;;  %v496_v5 = vsel %vm357_vm6, 0.0, %v470_v54 }
  0x6c   : > { %4208 = vmatprep.subr.bf16.mxu1 %v5417_v13  ;;  %v420_v1 = vrot.slane %v6052_v0, 7  ;;  %v5523_v61 = vpack.c.bf16 %v452_v11, %v492_v48  ;;  %v6056_v0 = vunpack.c.l.bf16 %v5195_v19  ;;  %v454_v11 = vsel %vm443_vm5, %v421_v18, %v437_v17 }
  0x6d   : > { %v438_v3 = vrot.slane %v6057_v50, 7  ;;  %v6059_v46 = vunpack.c.h.bf16 %v5203_v24  ;;  %v5569_v54 = vand.u32 %v3864_v7, %v4914_v4  ;;  %v6061_v4 = vunpack.c.h.bf16 %v5271_v34 }
  0x6e   : > { %v469_v15 = vsel %vm443_vm5, %v436_v56, %v420_v1  ;;  %v453_v26 = vsel %vm443_vm5, %v420_v1, %v436_v56  ;;  %v422_v60 = vrot.slane %v6056_v0, 7  ;;  %v6058_v1 = vunpack.c.l.bf16 %v5203_v24 }
  0x6f   : > { %v494_v28 = vsel %vm357_vm6, 0.0, %v469_v15  ;;  %v439_v48 = vrot.slane %v6059_v46, 7  ;;  %v5562_v15 = vpack.c.bf16 %v454_v11, %v496_v5  ;;  %v6060_v0 = vunpack.c.l.bf16 %v5271_v34 }
  0x70   : > { %v423_v56 = vrot.slane %v6058_v1, 7  ;;  %v5557_v47 = vpack.c.bf16 %v453_v26, %v494_v28  ;;  %v471_v18 = vsel %vm443_vm5, %v438_v3, %v422_v60  ;;  %v455_v26 = vsel %vm443_vm5, %v422_v60, %v438_v3 }
  0x71   : > { %4147 = vmatmul.mubr.msk.bf16.gmra.mrb[4].mxu1 %vm189_vm2, %v5375_v10  ;;  %v498_v28 = vsel %vm357_vm6, 0.0, %v471_v18  ;;  %v424_v50 = vrot.slane %v6060_v0, 7  ;;  %v440_v11 = vrot.slane %v6061_v4, 7  ;;  %v6062_v3 = vunpack.c.l.bf16 %v5283_v49 }
  0x72   : > { %4299 = vmatmul.mubr.msk.bf16.gmra.mrb[20].mxu0 %vm189_vm2, %v5421_v6  ;;  %4150 = vmatprep.mubr.msk.bf16.mxu1 %vm189_vm2, %v5423_v41  ;;  %v472_v17 = vsel %vm443_vm5, %v439_v48, %v423_v56  ;;  %v456_v5 = vsel %vm443_vm5, %v423_v56, %v439_v48  ;;  %v6063_v46 = vunpack.c.h.bf16 %v5283_v49  ;;  %v5597_v18 = vpack.c.bf16 %v455_v26, %v498_v28 }
  0x73   : > { %4302 = vmatprep.mubr.msk.bf16.mxu0 %vm189_vm2, %v5446_v37  ;;  %v500_v60 = vsel %vm357_vm6, 0.0, %v472_v17  ;;  %v425_v1 = vrot.slane %v6062_v3, 7  ;;  %v473_v0 = vsel %vm443_vm5, %v440_v11, %v424_v50  ;;  %v457_v48 = vsel %vm443_vm5, %v424_v50, %v440_v11 }
  0x74   : > { %v441_v7 = vrot.slane %v6063_v46, 7  ;;  %v502_v17 = vsel %vm357_vm6, 0.0, %v473_v0  ;;  %v6064_v26 = vunpack.c.l.bf16 %v5313_v52  ;;  %v442_v4 = vrot.slane %v410_v53, 7 }
  0x75   : > { %v5625_v3 = vpack.c.bf16 %v457_v48, %v502_v17 }
  0x76   : > { %v474_v56 = vsel %vm443_vm5, %v441_v7, %v425_v1  ;;  %v426_v28 = vrot.slane %v6064_v26, 7 }
  0x78   : > { %v475_v11 = vsel %vm443_vm5, %v442_v4, %v426_v28  ;;  %v459_v53 = vsel %vm443_vm5, %v426_v28, %v442_v4 }
  0x79   : > { %4151 = vmatmul.mubr.msk.bf16.gmra.mrb[8].mxu1 %vm189_vm2, %v5477_v51 }
  0x7a   : > { %4303 = vmatmul.mubr.msk.bf16.gmra.mrb[24].mxu0 %vm189_vm2, %v5467_v25  ;;  %4154 = vmatprep.mubr.msk.bf16.mxu1 %vm189_vm2, %v5479_v57 }
  0x7b   : > { %4306 = vmatprep.mubr.msk.bf16.mxu0 %vm189_vm2, %v5473_v55 }
  0x81   : > { %4155 = vmatmul.mubr.msk.bf16.gmra.mrb[12].mxu1 %vm189_vm2, %v5525_v32 }
  0x82   : > { %4307 = vmatmul.mubr.msk.bf16.gmra.mrb[28].mxu0 %vm189_vm2, %v5527_v58  ;;  %4158 = vmatprep.mubr.msk.bf16.mxu1 %vm189_vm2, %v5523_v61 }
  0x83   : > { %4312 = vmatprep.mubr.msk.bf16.mxu0 %vm189_vm2, %v5201_v23 }
  0x89   : > { %4159 = vmatmul.mubr.msk.bf16.gmra.mrb[16].mxu1 %vm189_vm2, %v5557_v47 }
  0x8a   : > { %4313 = vmatmul.mubr.msk.bf16.vlgmr.msra.gmra.mrb[0].mxu0 %vm189_vm2, %v5375_v10  ;;  %4162 = vmatprep.mubr.msk.bf16.mxu1 %vm189_vm2, %v5562_v15 }
  0x8b   : > { %4345 = vmatpush3.bf16.msra.mxu0 %v5145_v42  ;;  %4316 = vmatprep.mubr.msk.bf16.mxu0 %vm189_vm2, %v5423_v41  ;;  %v5599_v42 = vpack.c.bf16 %v456_v5, %v500_v60  ;;  %v458_v5 = vsel %vm443_vm5, %v425_v1, %v441_v7  ;;  %v504_v60 = vsel %vm357_vm6, 0.0, %v474_v56  ;;  %v506_v1 = vsel %vm357_vm6, 0.0, %v475_v11  ;;  %v6066_v11 = vld [vmem:[#allocation6_spill] sm:$0xff] }
  0x8c   : > { %4378 = vmatprep.subr.bf16.mxu0 %v5569_v54  ;;  %v5627_v50 = vpack.c.bf16 %v458_v5, %v504_v60  ;;  %v5643_v46 = vpack.c.bf16 %v459_v53, %v506_v1  ;;  %v6065_v7 = vpack.c.bf16 %v5008_v35, %v4993_v29  ;;  %v2393_v29 = vrot.slane %v1364_v62, 7 }
  0x8d   : > { %v2409_v35 = vrot.slane %v1365_v63, 7 }
  0x8f   : > { %v2441_v56 = vsel %vm443_vm5, %v2409_v35, %v2393_v29  ;;  %v2425_v62 = vsel %vm443_vm5, %v2393_v29, %v2409_v35 }
  0x90   : > { %v2471_v63 = vsel %vm357_vm6, 0.0, %v2441_v56 }
  0x91   : > { %4163 = vmatmul.mubr.msk.bf16.gmra.mrb[20].mxu1 %vm189_vm2, %v5597_v18  ;;  %v2489_v26 = vpack.c.bf16 %v2425_v62, %v2471_v63 }
  0x92   : > { %4317 = vmatmul.mubr.msk.bf16.gmra.mrb[4].mxu0 %vm189_vm2, %v5477_v51  ;;  %4166 = vmatprep.mubr.msk.bf16.mxu1 %vm189_vm2, %v5599_v42 }
  0x93   : > { %4320 = vmatprep.mubr.msk.bf16.mxu0 %vm189_vm2, %v5479_v57 }
  0x99   : > { %4167 = vmatmul.mubr.msk.bf16.gmra.mrb[24].mxu1 %vm189_vm2, %v5625_v3 }
  0x9a   : > { %4321 = vmatmul.mubr.msk.bf16.gmra.mrb[8].mxu0 %vm189_vm2, %v5525_v32  ;;  %4170 = vmatprep.mubr.msk.bf16.mxu1 %vm189_vm2, %v5627_v50 }
  0x9b   : > { %4324 = vmatprep.mubr.msk.bf16.mxu0 %vm189_vm2, %v5523_v61 }
  0xa1   : > { %4171 = vmatmul.mubr.msk.bf16.gmra.mrb[28].mxu1 %vm189_vm2, %v5643_v46 }
  0xa2   : > { %4325 = vmatmul.mubr.msk.bf16.gmra.mrb[12].mxu0 %vm189_vm2, %v5557_v47  ;;  %4176 = vmatprep.mubr.msk.bf16.mxu1 %vm189_vm2, %v6065_v7 }
  0xa3   : > { %4328 = vmatprep.mubr.msk.bf16.mxu0 %vm189_vm2, %v5562_v15 }
  0xa9   : > { %4177 = vmatmul.mubr.msk.bf16.vlgmr.msra.gmra.mrb[0].mxu1 %vm189_vm2, %v5087_v2  ;;  %v5669_v2 = vld [vmem:[#allocation2 + $0x88] sm:$0xff] }
  0xaa   : > { %4209 = vmatpush3.bf16.msra.mxu1 %v5417_v13  ;;  %4329 = vmatmul.mubr.msk.bf16.gmra.mrb[16].mxu0 %vm189_vm2, %v5597_v18  ;;  %v2377_v13 = vunpack.c.l.bf16 %v5669_v2  ;;  %v2378_v0 = vunpack.c.h.bf16 %v5669_v2 }
  0xab   : > { %4180 = vmatprep.mubr.msk.bf16.mxu1 %vm189_vm2, %v5132_v30  ;;  %4332 = vmatprep.mubr.msk.bf16.mxu0 %vm189_vm2, %v5599_v42 }
  0xac   : > { %4412 = vmatprep.subr.bf16.mxu1 %v4942_v9  ;;  %v2394_v48 = vrot.slane %v2377_v13, 7  ;;  %v2410_v17 = vrot.slane %v2378_v0, 7 }
  0xae   : > { %v2442_v28 = vsel %vm443_vm5, %v2410_v17, %v2394_v48  ;;  %v2426_v4 = vsel %vm443_vm5, %v2394_v48, %v2410_v17 }
  0xaf   : > { %v2473_v5 = vsel %vm357_vm6, 0.0, %v2442_v28 }
  0xb0   : > { %v2490_v60 = vpack.c.bf16 %v2426_v4, %v2473_v5 }
  0xb1   : > { %4181 = vmatmul.mubr.msk.bf16.gmra.mrb[4].mxu1 %vm189_vm2, %v5140_v39 }
  0xb2   : > { %4333 = vmatmul.mubr.msk.bf16.gmra.mrb[20].mxu0 %vm189_vm2, %v5625_v3  ;;  %4184 = vmatprep.mubr.msk.bf16.mxu1 %vm189_vm2, %v5197_v21 }
  0xb3   : > { %4336 = vmatprep.mubr.msk.bf16.mxu0 %vm189_vm2, %v5627_v50 }
  0xb9   : > { %4185 = vmatmul.mubr.msk.bf16.gmra.mrb[8].mxu1 %vm189_vm2, %v5205_v16 }
  0xba   : > { %4337 = vmatmul.mubr.msk.bf16.gmra.mrb[24].mxu0 %vm189_vm2, %v5643_v46  ;;  %4188 = vmatprep.mubr.msk.bf16.mxu1 %vm189_vm2, %v5273_v12 }
  0xbb   : > { %4340 = vmatprep.mubr.msk.bf16.mxu0 %vm189_vm2, %v2489_v26 }
  0xc1   : > { %4189 = vmatmul.mubr.msk.bf16.gmra.mrb[12].mxu1 %vm189_vm2, %v5285_v38 }
  0xc2   : > { %4341 = vmatmul.mubr.msk.bf16.gmra.mrb[28].mxu0 %vm189_vm2, %v2490_v60  ;;  %4192 = vmatprep.mubr.msk.bf16.mxu1 %vm189_vm2, %v5341_v45 }
  0xc3   : > { %4346 = vmatprep.mubr.msk.bf16.mxu0 %vm189_vm2, %v5014_v36  ;;  %v6067_v36 = vld [vmem:[#allocation7_spill] sm:$0xff] }
  0xc9   : > { %4193 = vmatmul.mubr.msk.bf16.gmra.mrb[16].mxu1 %vm189_vm2, %v5351_v44 }
  0xca   : > { %4347 = vmatmul.mubr.msk.bf16.vlgmr.msra.gmra.mrb[0].mxu0 %vm189_vm2, %v5028_v40  ;;  %4196 = vmatprep.mubr.msk.bf16.mxu1 %vm189_vm2, %v5373_v8  ;;  %v6068_v40 = vld [vmem:[#allocation8_spill] sm:$0xff] }
  0xcb   : > { %4379 = vmatpush3.bf16.msra.mxu0 %v5569_v54  ;;  %4350 = vmatprep.mubr.msk.bf16.mxu0 %vm189_vm2, %v5039_v43  ;;  %v6069_v43 = vld [vmem:[#allocation9_spill] sm:$0xff] }
  0xd1   : > { %4197 = vmatmul.mubr.msk.bf16.gmra.mrb[20].mxu1 %vm189_vm2, %v5385_v59 }
  0xd2   : > { %4351 = vmatmul.mubr.msk.bf16.gmra.mrb[4].mxu0 %vm189_vm2, %v6066_v11  ;;  %4200 = vmatprep.mubr.msk.bf16.mxu1 %vm189_vm2, %v5421_v6 }
  0xd3   : > { %4354 = vmatprep.mubr.msk.bf16.mxu0 %vm189_vm2, %v6067_v36 }
  0xd9   : > { %4201 = vmatmul.mubr.msk.bf16.gmra.mrb[24].mxu1 %vm189_vm2, %v5446_v37 }
  0xda   : > { %4355 = vmatmul.mubr.msk.bf16.gmra.mrb[8].mxu0 %vm189_vm2, %v6068_v40  ;;  %4204 = vmatprep.mubr.msk.bf16.mxu1 %vm189_vm2, %v5467_v25 }
  0xdb   : > { %4358 = vmatprep.mubr.msk.bf16.mxu0 %vm189_vm2, %v6069_v43 }
  0xe1   : > { %4205 = vmatmul.mubr.msk.bf16.gmra.mrb[28].mxu1 %vm189_vm2, %v5473_v55 }
  0xe2   : > { %4359 = vmatmul.mubr.msk.bf16.gmra.mrb[12].mxu0 %vm189_vm2, %v5134_v31  ;;  %4210 = vmatprep.mubr.msk.bf16.mxu1 %vm189_vm2, %v5199_v22 }
  0xe3   : > { %4362 = vmatprep.mubr.msk.bf16.mxu0 %vm189_vm2, %v5138_v33 }
  0xe9   : > { %4211 = vmatmul.mubr.msk.bf16.vlgmr.msra.gmra.mrb[0].mxu1 %vm189_vm2, %v5201_v23 }
  0xea   : > { %4413 = vmatpush3.bf16.msra.mxu1 %v4942_v9  ;;  %4363 = vmatmul.mubr.msk.bf16.gmra.mrb[16].mxu0 %vm189_vm2, %v5195_v19  ;;  %v4745_v9 = vld [vmem:[#allocation2 + $0x48] sm:$0xff] }
  0xeb   : > { %4214 = vmatprep.mubr.msk.bf16.mxu1 %vm189_vm2, %v5375_v10  ;;  %4366 = vmatprep.mubr.msk.bf16.mxu0 %vm189_vm2, %v5203_v24 }
  0xf1   : > { %4215 = vmatmul.mubr.msk.bf16.gmra.mrb[4].mxu1 %vm189_vm2, %v5423_v41 }
  0xf2   : > { %4367 = vmatmul.mubr.msk.bf16.gmra.mrb[20].mxu0 %vm189_vm2, %v5271_v34  ;;  %4218 = vmatprep.mubr.msk.bf16.mxu1 %vm189_vm2, %v5477_v51 }
  0xf3   : > { %4370 = vmatprep.mubr.msk.bf16.mxu0 %vm189_vm2, %v5283_v49 }
  0xf9   : > { %4219 = vmatmul.mubr.msk.bf16.gmra.mrb[8].mxu1 %vm189_vm2, %v5479_v57 }
  0xfa   : > { %4371 = vmatmul.mubr.msk.bf16.gmra.mrb[24].mxu0 %vm189_vm2, %v5313_v52  ;;  %4222 = vmatprep.mubr.msk.bf16.mxu1 %vm189_vm2, %v5525_v32 }
  0xfb   : > { %4374 = vmatprep.mubr.msk.bf16.mxu0 %vm189_vm2, %v5440_v27 }
 0x101   : > { %4223 = vmatmul.mubr.msk.bf16.gmra.mrb[12].mxu1 %vm189_vm2, %v5523_v61 }
 0x102   : > { %4375 = vmatmul.mubr.msk.bf16.gmra.mrb[28].mxu0 %vm189_vm2, %v5669_v2  ;;  %4226 = vmatprep.mubr.msk.bf16.mxu1 %vm189_vm2, %v5557_v47 }
 0x103   : > { %4380 = vmatprep.mubr.msk.bf16.mxu0 %vm189_vm2, %v5132_v30  ;;  %v4746_v30 = vld [vmem:[#allocation2 + $0x50] sm:$0xff] }
 0x109   : > { %4227 = vmatmul.mubr.msk.bf16.gmra.mrb[16].mxu1 %vm189_vm2, %v5562_v15 }
 0x10a   : > { %4381 = vmatmul.mubr.msk.bf16.vlgmr.msra.gmra.mrb[0].mxu0 %vm189_vm2, %v5140_v39  ;;  %4230 = vmatprep.mubr.msk.bf16.mxu1 %vm189_vm2, %v5597_v18 }
 0x10b   : > { %4384 = vmatprep.mubr.msk.bf16.mxu0 %vm189_vm2, %v5197_v21 }
 0x111   : > { %4231 = vmatmul.mubr.msk.bf16.gmra.mrb[20].mxu1 %vm189_vm2, %v5599_v42 }
 0x112   : > { %4385 = vmatmul.mubr.msk.bf16.gmra.mrb[4].mxu0 %vm189_vm2, %v5205_v16  ;;  %4234 = vmatprep.mubr.msk.bf16.mxu1 %vm189_vm2, %v5625_v3 }
 0x113   : > { %4388 = vmatprep.mubr.msk.bf16.mxu0 %vm189_vm2, %v5273_v12 }
 0x119   : > { %4235 = vmatmul.mubr.msk.bf16.gmra.mrb[24].mxu1 %vm189_vm2, %v5627_v50 }
 0x11a   : > { %4389 = vmatmul.mubr.msk.bf16.gmra.mrb[8].mxu0 %vm189_vm2, %v5285_v38  ;;  %4238 = vmatprep.mubr.msk.bf16.mxu1 %vm189_vm2, %v5643_v46  ;;  %v2506_v38 = vrot.slane %v2377_v13, 1 }
 0x11b   : > { %4392 = vmatprep.mubr.msk.bf16.mxu0 %vm189_vm2, %v5341_v45  ;;  %v2522_v45 = vrot.slane %v2378_v0, 1 }
 0x11d   : > { %v2554_v31 = vsel %vm556_vm3, %v2522_v45, %v2506_v38  ;;  %v2538_v33 = vsel %vm556_vm3, %v2506_v38, %v2522_v45 }
 0x11e   : > { %v2586_v39 = vsel %vm360_vm4, 0.0, %v2554_v31 }
 0x121   : > { %4239 = vmatmul.mubr.msk.bf16.gmra.mrb[28].mxu1 %vm189_vm2, %v2489_v26 }
 0x122   : > { %4393 = vmatmul.mubr.msk.bf16.gmra.mrb[12].mxu0 %vm189_vm2, %v5351_v44  ;;  %4260 = vmatprep.mubr.msk.bf16.mxu1 %vm189_vm2, %v4745_v9 }
 0x123   : > { %4396 = vmatprep.mubr.msk.bf16.mxu0 %vm189_vm2, %v5373_v8 }
 0x129   : > { %4261 = vmatmul.mubr.msk.bf16.vlgmr.msra.gmra.mrb[16].mxu1 %vm189_vm2, %v4746_v30 }
 0x12a   : > { %4397 = vmatmul.mubr.msk.bf16.gmra.mrb[16].mxu0 %vm189_vm2, %v5385_v59  ;;  %4264 = vmatprep.mubr.msk.bf16.mxu1 %vm189_vm2, %v5195_v19  ;;  %v2602_v19 = vpack.c.bf16 %v2586_v39, %v2538_v33 }
 0x12b   : > { %4400 = vmatprep.mubr.msk.bf16.mxu0 %vm189_vm2, %v5421_v6 }
 0x131   : > { %4265 = vmatmul.mubr.msk.bf16.gmra.mrb[20].mxu1 %vm189_vm2, %v5203_v24 }
 0x132   : > { %4401 = vmatmul.mubr.msk.bf16.gmra.mrb[20].mxu0 %vm189_vm2, %v5446_v37  ;;  %4268 = vmatprep.mubr.msk.bf16.mxu1 %vm189_vm2, %v5271_v34 }
 0x133   : > { %4404 = vmatprep.mubr.msk.bf16.mxu0 %vm189_vm2, %v5467_v25 }
 0x139   : > { %4269 = vmatmul.mubr.msk.bf16.gmra.mrb[24].mxu1 %vm189_vm2, %v5283_v49 }
 0x13a   : > { %4405 = vmatmul.mubr.msk.bf16.gmra.mrb[24].mxu0 %vm189_vm2, %v5473_v55  ;;  %4272 = vmatprep.mubr.msk.bf16.mxu1 %vm189_vm2, %v5313_v52 }
 0x13b   : > { %4408 = vmatprep.mubr.msk.bf16.mxu0 %vm189_vm2, %v5527_v58 }
 0x141   : > { %4273 = vmatmul.mubr.msk.bf16.gmra.mrb[28].mxu1 %vm189_vm2, %v5440_v27  ;;  %v5859_v27 = vld [vmem:[%s6026_s2] ss:$0 sm:$0xff] }
 0x142   : > { %4409 = vmatmul.mubr.msk.bf16.gmra.mrb[28].mxu0 %vm189_vm2, %v2602_v19 }
 0x1bc   : > { %v4212_v21 = vpop.f32.mrb[0].mxu1 }
 0x1bd   : > { %v1677_v22 = vpop.f32.mrb[1].mxu1 }
 0x1be   : > { %v4213_v23 = vpop.f32.mrb[2].mxu1 }
 0x1bf   : > { %v1680_v24 = vpop.f32.mrb[3].mxu1 }
 0x1c4   : > { %v4216_v16 = vpop.f32.mrb[4].mxu1 }
 0x1c5   : > { %v1693_v52 = vpop.f32.mrb[5].mxu1 }
 0x1c6   : > { %v4217_v34 = vpop.f32.mrb[6].mxu1 }
 0x1c7   : > { %v1696_v12 = vpop.f32.mrb[7].mxu1 }
 0x1cc   : > { %v4220_v14 = vpop.f32.mrb[8].mxu1 }
 0x1cd   : > { %v1709_v49 = vpop.f32.mrb[9].mxu1 }
 0x1ce   : > { %v5843_v20 = vpop.f32.mrb[10].mxu1 }
 0x1cf   : > { %v5845_v44 = vpop.f32.mrb[11].mxu1 }
 0x1d4   : > { %v5847_v8 = vpop.f32.mrb[12].mxu1 }
 0x1d5   : > { %v5849_v10 = vpop.f32.mrb[13].mxu1 }
 0x1d6   : > { %v5851_v59 = vpop.f32.mrb[14].mxu1 }
 0x1d7   : > { %v5853_v6 = vpop.f32.mrb[15].mxu1 }
 0x1dd   : > { %v4382_v41 = vpop.f32.mrb[0].mxu0 }
 0x1de   : > { %v4414_v37 = vadd.f32 %v4382_v41, %v4212_v21  ;;  %v3182_v25 = vpop.f32.mrb[1].mxu0 }
 0x1df   : > { %v4415_v55 = vadd.f32 %v3182_v25, %v1677_v22  ;;  %v4383_v51 = vpop.f32.mrb[2].mxu0 }
 0x1e0   : > { %v3350_v57 = vadd.f32 %v4414_v37, %v5859_v27  ;;  %v4416_v61 = vadd.f32 %v4383_v51, %v4213_v23  ;;  %v3185_v32 = vpop.f32.mrb[3].mxu0 }
 0x1e1   : > { %v3348_v58 = vadd.f32 %v4415_v55, %v5859_v27  ;;  %v4417_v47 = vadd.f32 %v3185_v32, %v1680_v24 }
 0x1e2   : > { %v3382_v15 = vmax.f32 %v3350_v57, 0.0  ;;  %v3351_v54 = vadd.f32 %v4416_v61, %v5859_v27 }
 0x1e3   : > { %v3380_v18 = vmax.f32 %v3348_v58, 0.0  ;;  %v3349_v42 = vadd.f32 %v4417_v47, %v5859_v27 }
 0x1e4   : > { %v3922_v3 = vpack.c.bf16 %v3382_v15, %v3382_v15  ;;  %v3383_v50 = vmax.f32 %v3351_v54, 0.0 }
 0x1e5   : > { %v3920_v53 = vpack.c.bf16 %v3380_v18, %v3380_v18  ;;  %v3381_v1 = vmax.f32 %v3349_v42, 0.0  ;;  %v4386_v46 = vpop.f32.mrb[4].mxu0 }
 0x1e6   : > { %3543 = vst.msk [vmem:[%s5867_s9 + $0x8] sm:$0xf] %vm3540_vm7, %v3922_v3  ;;  %v3923_v7 = vpack.c.bf16 %v3383_v50, %v3383_v50  ;;  %v4418_v29 = vadd.f32 %v4386_v46, %v4216_v16  ;;  %v3198_v35 = vpop.f32.mrb[5].mxu0 }
 0x1e7   : > { %3541 = vst.msk [vmem:[%s5867_s9] sm:$0xf] %vm3540_vm7, %v3920_v53  ;;  %v3921_v2 = vpack.c.bf16 %v3381_v1, %v3381_v1  ;;  %v4419_v13 = vadd.f32 %v3198_v35, %v1693_v52  ;;  %v4387_v0 = vpop.f32.mrb[6].mxu0 }
 0x1e8   : > { %3544 = vst.msk [vmem:[%s5867_s9 + $0xc] sm:$0xf] %vm3540_vm7, %v3923_v7  ;;  %v3354_v56 = vadd.f32 %v4418_v29, %v5859_v27  ;;  %v4420_v62 = vadd.f32 %v4387_v0, %v4217_v34  ;;  %v3201_v63 = vpop.f32.mrb[7].mxu0 }
 0x1e9   : > { %3542 = vst.msk [vmem:[%s5867_s9 + $0x4] sm:$0xf] %vm3540_vm7, %v3921_v2  ;;  %v3352_v48 = vadd.f32 %v4419_v13, %v5859_v27  ;;  %v4421_v17 = vadd.f32 %v3201_v63, %v1696_v12 }
 0x1ea   : > { %v3386_v26 = vmax.f32 %v3354_v56, 0.0  ;;  %v3355_v28 = vadd.f32 %v4420_v62, %v5859_v27 }
 0x1eb   : > { %v3384_v4 = vmax.f32 %v3352_v48, 0.0  ;;  %v3353_v5 = vadd.f32 %v4421_v17, %v5859_v27 }
 0x1ec   : > { %v3926_v60 = vpack.c.bf16 %v3386_v26, %v3386_v26  ;;  %v3387_v11 = vmax.f32 %v3355_v28, 0.0 }
 0x1ed   : > { %v3924_v36 = vpack.c.bf16 %v3384_v4, %v3384_v4  ;;  %v3385_v40 = vmax.f32 %v3353_v5, 0.0  ;;  %v4390_v43 = vpop.f32.mrb[8].mxu0 }
 0x1ee   : > { %3547 = vst.msk [vmem:[%s5867_s9 + $0x18] sm:$0xf] %vm3540_vm7, %v3926_v60  ;;  %v3927_v9 = vpack.c.bf16 %v3387_v11, %v3387_v11  ;;  %v4422_v30 = vadd.f32 %v4390_v43, %v4220_v14  ;;  %v3214_v38 = vpop.f32.mrb[9].mxu0 }
 0x1ef   : > { %3545 = vst.msk [vmem:[%s5867_s9 + $0x10] sm:$0xf] %vm3540_vm7, %v3924_v36  ;;  %v3925_v45 = vpack.c.bf16 %v3385_v40, %v3385_v40  ;;  %v4423_v31 = vadd.f32 %v3214_v38, %v1709_v49  ;;  %v4391_v33 = vpop.f32.mrb[10].mxu0 }
 0x1f0   : > { %3548 = vst.msk [vmem:[%s5867_s9 + $0x1c] sm:$0xf] %vm3540_vm7, %v3927_v9  ;;  %v3358_v39 = vadd.f32 %v4422_v30, %v5859_v27  ;;  %v4424_v19 = vadd.f32 %v4391_v33, %v5843_v20  ;;  %v3217_v21 = vpop.f32.mrb[11].mxu0 }
 0x1f1   : > { %3546 = vst.msk [vmem:[%s5867_s9 + $0x14] sm:$0xf] %vm3540_vm7, %v3925_v45  ;;  %v3356_v22 = vadd.f32 %v4423_v31, %v5859_v27  ;;  %v4425_v23 = vadd.f32 %v3217_v21, %v5845_v44 }
 0x1f2   : > { %v3390_v24 = vmax.f32 %v3358_v39, 0.0  ;;  %v3359_v16 = vadd.f32 %v4424_v19, %v5859_v27 }
 0x1f3   : > { %v3388_v52 = vmax.f32 %v3356_v22, 0.0  ;;  %v3357_v34 = vadd.f32 %v4425_v23, %v5859_v27 }
 0x1f4   : > { %v3930_v12 = vpack.c.bf16 %v3390_v24, %v3390_v24  ;;  %v3391_v14 = vmax.f32 %v3359_v16, 0.0 }
 0x1f5   : > { %v3928_v49 = vpack.c.bf16 %v3388_v52, %v3388_v52  ;;  %v3389_v20 = vmax.f32 %v3357_v34, 0.0  ;;  %v4394_v41 = vpop.f32.mrb[12].mxu0 }
 0x1f6   : > { %3551 = vst.msk [vmem:[%s5867_s9 + $0x28] sm:$0xf] %vm3540_vm7, %v3930_v12  ;;  %v3931_v37 = vpack.c.bf16 %v3391_v14, %v3391_v14  ;;  %v4426_v25 = vadd.f32 %v4394_v41, %v5847_v8  ;;  %v3230_v55 = vpop.f32.mrb[13].mxu0 }
 0x1f7   : > { %3549 = vst.msk [vmem:[%s5867_s9 + $0x20] sm:$0xf] %vm3540_vm7, %v3928_v49  ;;  %v3929_v44 = vpack.c.bf16 %v3389_v20, %v3389_v20  ;;  %v4427_v51 = vadd.f32 %v3230_v55, %v5849_v10  ;;  %v4395_v57 = vpop.f32.mrb[14].mxu0 }
 0x1f8   : > { %3552 = vst.msk [vmem:[%s5867_s9 + $0x2c] sm:$0xf] %vm3540_vm7, %v3931_v37  ;;  %v3362_v61 = vadd.f32 %v4426_v25, %v5859_v27  ;;  %v4428_v32 = vadd.f32 %v4395_v57, %v5851_v59  ;;  %v3233_v58 = vpop.f32.mrb[15].mxu0 }
 0x1f9   : > { %3550 = vst.msk [vmem:[%s5867_s9 + $0x24] sm:$0xf] %vm3540_vm7, %v3929_v44  ;;  %v3360_v47 = vadd.f32 %v4427_v51, %v5859_v27  ;;  %v4429_v8 = vadd.f32 %v3233_v58, %v5853_v6 }
 0x1fa   : > { %v3394_v15 = vmax.f32 %v3362_v61, 0.0  ;;  %v3363_v54 = vadd.f32 %v4428_v32, %v5859_v27 }
 0x1fb   : > { %v3392_v10 = vmax.f32 %v3360_v47, 0.0  ;;  %v3361_v18 = vadd.f32 %v4429_v8, %v5859_v27 }
 0x1fc   : > { %v3934_v42 = vpack.c.bf16 %v3394_v15, %v3394_v15  ;;  %v3395_v3 = vmax.f32 %v3363_v54, 0.0  ;;  %v4262_v50 = vpop.f32.mrb[16].mxu1 }
 0x1fd   : > { %v3932_v59 = vpack.c.bf16 %v3392_v10, %v3392_v10  ;;  %v3393_v53 = vmax.f32 %v3361_v18, 0.0  ;;  %v1987_v1 = vpop.f32.mrb[17].mxu1  ;;  %v4398_v46 = vpop.f32.mrb[16].mxu0 }
 0x1fe   : > { %3555 = vst.msk [vmem:[%s5867_s9 + $0x38] sm:$0xf] %vm3540_vm7, %v3934_v42  ;;  %v3935_v7 = vpack.c.bf16 %v3395_v3, %v3395_v3  ;;  %v4430_v6 = vadd.f32 %v4398_v46, %v4262_v50  ;;  %v4263_v29 = vpop.f32.mrb[18].mxu1  ;;  %v3246_v35 = vpop.f32.mrb[17].mxu0 }
 0x1ff   : > { %3553 = vst.msk [vmem:[%s5867_s9 + $0x30] sm:$0xf] %vm3540_vm7, %v3932_v59  ;;  %v3933_v2 = vpack.c.bf16 %v3393_v53, %v3393_v53  ;;  %v4431_v13 = vadd.f32 %v3246_v35, %v1987_v1  ;;  %v1990_v0 = vpop.f32.mrb[19].mxu1  ;;  %v4399_v56 = vpop.f32.mrb[18].mxu0 }
 0x200   : > { %3556 = vst.msk [vmem:[%s5867_s9 + $0x3c] sm:$0xf] %vm3540_vm7, %v3935_v7  ;;  %v3366_v62 = vadd.f32 %v4430_v6, %v5859_v27  ;;  %v4432_v63 = vadd.f32 %v4399_v56, %v4263_v29  ;;  %v3249_v48 = vpop.f32.mrb[19].mxu0 }
 0x201   : > { %3554 = vst.msk [vmem:[%s5867_s9 + $0x34] sm:$0xf] %vm3540_vm7, %v3933_v2  ;;  %v3364_v17 = vadd.f32 %v4431_v13, %v5859_v27  ;;  %v4433_v26 = vadd.f32 %v3249_v48, %v1990_v0 }
 0x202   : > { %v3398_v28 = vmax.f32 %v3366_v62, 0.0  ;;  %v3367_v4 = vadd.f32 %v4432_v63, %v5859_v27 }
 0x203   : > { %v3396_v5 = vmax.f32 %v3364_v17, 0.0  ;;  %v3365_v60 = vadd.f32 %v4433_v26, %v5859_v27 }
 0x204   : > { %v3938_v11 = vpack.c.bf16 %v3398_v28, %v3398_v28  ;;  %v3399_v36 = vmax.f32 %v3367_v4, 0.0  ;;  %v4266_v40 = vpop.f32.mrb[20].mxu1 }
 0x205   : > { %v3936_v43 = vpack.c.bf16 %v3396_v5, %v3396_v5  ;;  %v3397_v9 = vmax.f32 %v3365_v60, 0.0  ;;  %v2003_v30 = vpop.f32.mrb[21].mxu1  ;;  %v4402_v38 = vpop.f32.mrb[20].mxu0 }
 0x206   : > { %3559 = vst.msk [vmem:[%s5867_s9 + $0x48] sm:$0xf] %vm3540_vm7, %v3938_v11  ;;  %v3939_v45 = vpack.c.bf16 %v3399_v36, %v3399_v36  ;;  %v4434_v31 = vadd.f32 %v4402_v38, %v4266_v40  ;;  %v4267_v33 = vpop.f32.mrb[22].mxu1  ;;  %v3262_v39 = vpop.f32.mrb[21].mxu0 }
 0x207   : > { %3557 = vst.msk [vmem:[%s5867_s9 + $0x40] sm:$0xf] %vm3540_vm7, %v3936_v43  ;;  %v3937_v19 = vpack.c.bf16 %v3397_v9, %v3397_v9  ;;  %v4435_v21 = vadd.f32 %v3262_v39, %v2003_v30  ;;  %v2006_v22 = vpop.f32.mrb[23].mxu1  ;;  %v4403_v23 = vpop.f32.mrb[22].mxu0 }
 0x208   : > { %3560 = vst.msk [vmem:[%s5867_s9 + $0x4c] sm:$0xf] %vm3540_vm7, %v3939_v45  ;;  %v3370_v24 = vadd.f32 %v4434_v31, %v5859_v27  ;;  %v4436_v16 = vadd.f32 %v4403_v23, %v4267_v33  ;;  %v3265_v52 = vpop.f32.mrb[23].mxu0 }
 0x209   : > { %3558 = vst.msk [vmem:[%s5867_s9 + $0x44] sm:$0xf] %vm3540_vm7, %v3937_v19  ;;  %v3368_v34 = vadd.f32 %v4435_v21, %v5859_v27  ;;  %v4437_v12 = vadd.f32 %v3265_v52, %v2006_v22 }
 0x20a   : > { %v3402_v14 = vmax.f32 %v3370_v24, 0.0  ;;  %v3371_v49 = vadd.f32 %v4436_v16, %v5859_v27 }
 0x20b   : > { %v3400_v20 = vmax.f32 %v3368_v34, 0.0  ;;  %v3369_v41 = vadd.f32 %v4437_v12, %v5859_v27 }
 0x20c   : > { %v3942_v37 = vpack.c.bf16 %v3402_v14, %v3402_v14  ;;  %v3403_v25 = vmax.f32 %v3371_v49, 0.0  ;;  %v4270_v55 = vpop.f32.mrb[24].mxu1 }
 0x20d   : > { %v3940_v44 = vpack.c.bf16 %v3400_v20, %v3400_v20  ;;  %v3401_v51 = vmax.f32 %v3369_v41, 0.0  ;;  %v2019_v57 = vpop.f32.mrb[25].mxu1  ;;  %v4406_v61 = vpop.f32.mrb[24].mxu0 }
 0x20e   : > { %3563 = vst.msk [vmem:[%s5867_s9 + $0x58] sm:$0xf] %vm3540_vm7, %v3942_v37  ;;  %v3943_v32 = vpack.c.bf16 %v3403_v25, %v3403_v25  ;;  %v4438_v58 = vadd.f32 %v4406_v61, %v4270_v55  ;;  %v4271_v47 = vpop.f32.mrb[26].mxu1  ;;  %v3278_v8 = vpop.f32.mrb[25].mxu0 }
 0x20f   : > { %3561 = vst.msk [vmem:[%s5867_s9 + $0x50] sm:$0xf] %vm3540_vm7, %v3940_v44  ;;  %v3941_v15 = vpack.c.bf16 %v3401_v51, %v3401_v51  ;;  %v4439_v54 = vadd.f32 %v3278_v8, %v2019_v57  ;;  %v2022_v10 = vpop.f32.mrb[27].mxu1  ;;  %v4407_v18 = vpop.f32.mrb[26].mxu0 }
 0x210   : > { %3564 = vst.msk [vmem:[%s5867_s9 + $0x5c] sm:$0xf] %vm3540_vm7, %v3943_v32  ;;  %v3374_v42 = vadd.f32 %v4438_v58, %v5859_v27  ;;  %v4440_v3 = vadd.f32 %v4407_v18, %v4271_v47  ;;  %v3281_v50 = vpop.f32.mrb[27].mxu0 }
 0x211   : > { %3562 = vst.msk [vmem:[%s5867_s9 + $0x54] sm:$0xf] %vm3540_vm7, %v3941_v15  ;;  %v3372_v59 = vadd.f32 %v4439_v54, %v5859_v27  ;;  %v4441_v53 = vadd.f32 %v3281_v50, %v2022_v10 }
 0x212   : > { %v3406_v1 = vmax.f32 %v3374_v42, 0.0  ;;  %v3375_v46 = vadd.f32 %v4440_v3, %v5859_v27 }
 0x213   : > { %v3404_v7 = vmax.f32 %v3372_v59, 0.0  ;;  %v3373_v6 = vadd.f32 %v4441_v53, %v5859_v27 }
 0x214   : > { %v3946_v29 = vpack.c.bf16 %v3406_v1, %v3406_v1  ;;  %v3407_v35 = vmax.f32 %v3375_v46, 0.0  ;;  %v4274_v2 = vpop.f32.mrb[28].mxu1 }
 0x215   : > { %v3944_v13 = vpack.c.bf16 %v3404_v7, %v3404_v7  ;;  %v3405_v0 = vmax.f32 %v3373_v6, 0.0  ;;  %v2035_v56 = vpop.f32.mrb[29].mxu1  ;;  %v4410_v62 = vpop.f32.mrb[28].mxu0 }
 0x216   : > { %3567 = vst.msk [vmem:[%s5867_s9 + $0x68] sm:$0xf] %vm3540_vm7, %v3946_v29  ;;  %v3947_v63 = vpack.c.bf16 %v3407_v35, %v3407_v35  ;;  %v4442_v48 = vadd.f32 %v4410_v62, %v4274_v2  ;;  %v4275_v17 = vpop.f32.mrb[30].mxu1  ;;  %v3294_v26 = vpop.f32.mrb[29].mxu0 }
 0x217   : > { %3565 = vst.msk [vmem:[%s5867_s9 + $0x60] sm:$0xf] %vm3540_vm7, %v3944_v13  ;;  %v3945_v28 = vpack.c.bf16 %v3405_v0, %v3405_v0  ;;  %v4443_v4 = vadd.f32 %v3294_v26, %v2035_v56  ;;  %v2038_v5 = vpop.f32.mrb[31].mxu1  ;;  %v4411_v60 = vpop.f32.mrb[30].mxu0 }
 0x218   : > { %3568 = vst.msk [vmem:[%s5867_s9 + $0x6c] sm:$0xf] %vm3540_vm7, %v3947_v63  ;;  %v3378_v11 = vadd.f32 %v4442_v48, %v5859_v27  ;;  %v4444_v36 = vadd.f32 %v4411_v60, %v4275_v17  ;;  %v3297_v40 = vpop.f32.mrb[31].mxu0 }
 0x219   : > { %3566 = vst.msk [vmem:[%s5867_s9 + $0x64] sm:$0xf] %vm3540_vm7, %v3945_v28  ;;  %v3376_v43 = vadd.f32 %v4443_v4, %v5859_v27  ;;  %v4445_v9 = vadd.f32 %v3297_v40, %v2038_v5 }
 0x21a   : > { %v3410_v30 = vmax.f32 %v3378_v11, 0.0  ;;  %v3379_v38 = vadd.f32 %v4444_v36, %v5859_v27 }
 0x21b   : > { %v3408_v45 = vmax.f32 %v3376_v43, 0.0  ;;  %v3377_v31 = vadd.f32 %v4445_v9, %v5859_v27 }
 0x21c   : > { %v3950_v33 = vpack.c.bf16 %v3410_v30, %v3410_v30  ;;  %v3411_v39 = vmax.f32 %v3379_v38, 0.0 }
 0x21d   : > { %v3948_v19 = vpack.c.bf16 %v3408_v45, %v3408_v45  ;;  %v3409_v21 = vmax.f32 %v3377_v31, 0.0 }
 0x21e   : > { %3571 = vst.msk [vmem:[%s5867_s9 + $0x78] sm:$0xf] %vm3540_vm7, %v3950_v33  ;;  %v3951_v22 = vpack.c.bf16 %v3411_v39, %v3411_v39 }
 0x21f   : > { %3569 = vst.msk [vmem:[%s5867_s9 + $0x70] sm:$0xf] %vm3540_vm7, %v3948_v19  ;;  %v3949_v27 = vpack.c.bf16 %v3409_v21, %v3409_v21 }
 0x220   : > { %3572 = vst.msk [vmem:[%s5867_s9 + $0x7c] sm:$0xf] %vm3540_vm7, %v3951_v22 }
 0x221   : > { %3570 = vst.msk [vmem:[%s5867_s9 + $0x74] sm:$0xf] %vm3540_vm7, %v3949_v27 }
 0x222   : > { %4760 = shalt.err (!%p4757_p5)
}
 0x223   : > { %s4761_s29 = scalar_lea.hbm %s5966_s21, 2048  ;;  %s4765_s5 = scalar_lea.hbm %s6027_s3, 4096 }
 0x224   : > { %p4762_p6 = scmp.ne.s32.totalorder %s5966_s21, %s4761_s29  ;;  %p4766_p10 = scmp.lt.u32.totalorder %s5966_s21, %s6027_s3 }
 0x225   : > { %p4767_p11 = scmp.lt.u32.totalorder %s4765_s5, %s4761_s29  ;;  %p4769_p13 = scmp.lt.u32.totalorder %s4761_s29, %s5966_s21 }
 0x226   : > { %p4763_p7 = pnand %p4762_p6, %p4892_p4 }
 0x227   : > { %p4768_p12 = por %p4767_p11, %p4766_p10 }
 0x228   : > { %p4764_p9 = pneg %p4763_p7 }
 0x229   : > { %p4770_p0 = por %p4769_p13, %p4768_p12 }
 0x22b   : > { %p4771_p1 = pnand %p4770_p0, %p4764_p9 }
 0x22d   : > { %4774 = shalt.err (!%p4771_p1)
}
 0x22e   : > { %s4830_s8 = smov 64   ;;  %s4831_s9 = smov 4  }
 0x22f   : > { %4670 = dma.vmem_to_hbm [thread:$0]  (%p4892_p4), %s5968_s11, 2048, %s5966_s21, %s5978_s15, %s4830_s8, %s4830_s8, %s4831_s9  }
 0x230 PF: > { %p4676_p2 = scmp.ge.s32.totalorder %s4825_s17, 2  ;;  %s3605_s10 = sand.u32 1, %s4805_s12  }
 0x231   : > { %s3606_s18 = scalar_lea.sflag [#allocation4], %s3605_s10 }
 0x232   : > { %p4673_p3 = pnand %p4676_p2, %p4899_p8 }
 0x234   : > { %4800 = dma.done.wait (!%p4673_p3), %s3606_s18, 2048  }
 0x235   : > { %4802 = vsyncadd (!%p4673_p3), %s3606_s18, 4294965248  ;;  %s16_s17 = sadd.s32 1, %s4825_s17   ;;  %s6070_s12 = smov %s4809_s13 }
 0x236   : > { %p13_p5 = scmp.ge.s32.totalorder %s16_s17, 4   ;;  %s6071_s13 = smov %s4813_s14 }
 0x237   : > { %s6072_s14 = smov %s4905_s25  ;;  %s6073_s15 = smov %s4821_s16 }
 0x238   : > { %s6074_s16 = smov %s6076_s20  ;;  %15 = sbr.rel (!%p13_p5) target bundleno = 4 (0x4), region = 83 }
 0x23f   :  { %3611 = vsyncpa [#allocation4], 1 }
 0x240   :  { %3613 = vsyncpa [#allocation4 + $0x1], 1 }

</bundles_post_ra>
